<compile_context>
chip_gen: v5e
topology: v5e:2x2
jax: 0.10.0
libtpu: 0.0.40
codegen_flags: <defaults>
</compile_context>

<pallas_src>
import functools

import jax
import jax.numpy as jnp
from jax.experimental import pallas as pl
from jax.experimental.pallas import tpu as pltpu


# --------------------------------------------------------------------------
# helpers
# --------------------------------------------------------------------------
def _pick_tile(dim, desired, granule):
    """Largest tile <= desired that divides dim and is a multiple of granule,
    falling back to the full dim (always legal: block == array dim)."""
    if dim <= desired:
        return dim
    t = desired - (desired % granule)
    while t >= granule:
        if dim % t == 0:
            return t
        t -= granule
    return dim


def _apply_activation(y, activation):
    if activation == "gelu":
        # TODO(synk): HF BERT uses exact erf-GELU; tanh approximation used
        # here (Mosaic-friendly, matches torch GELU(approximate='tanh')).
        c = jnp.float32(0.7978845608028654)  # sqrt(2/pi)
        return 0.5 * y * (1.0 + jnp.tanh(c * (y + 0.044715 * y * y * y)))
    if activation == "tanh":
        return jnp.tanh(y)
    return y


def _ln_core(x, g, b, eps):
    mu = jnp.mean(x, axis=-1, keepdims=True)
    xc = x - mu
    var = jnp.mean(xc * xc, axis=-1, keepdims=True)
    return xc * jax.lax.rsqrt(var + eps) * g + b


# --------------------------------------------------------------------------
# linear: x @ W + b (optional fused activation)
# --------------------------------------------------------------------------
def _linear_single_kernel(x_ref, w_ref, b_ref, o_ref, *, activation):
    # whole contraction in one step: no accumulator round-trip
    y = jnp.dot(x_ref[...], w_ref[...],
                preferred_element_type=jnp.float32) + b_ref[...]
    o_ref[...] = _apply_activation(y, activation).astype(o_ref.dtype)


def _linear_acc_kernel(x_ref, w_ref, b_ref, o_ref, acc_ref, *, activation):
    @pl.when(pl.program_id(2) == 0)
    def _():
        acc_ref[...] = jnp.zeros_like(acc_ref)

    acc_ref[...] += jnp.dot(x_ref[...], w_ref[...],
                            preferred_element_type=jnp.float32)

    @pl.when(pl.program_id(2) == pl.num_programs(2) - 1)
    def _():
        y = acc_ref[...] + b_ref[...]
        o_ref[...] = _apply_activation(y, activation).astype(o_ref.dtype)


def pallas_linear(x, w, b, activation=None, out_dtype=jnp.bfloat16,
                  tm=1024, tn=1024, tk=1024):
    M, K = x.shape
    N = w.shape[1]
    tm = _pick_tile(M, tm, 8)
    tn = _pick_tile(N, tn, 128)
    tk = _pick_tile(K, tk, 128)
    bias = b.reshape(1, N).astype(jnp.float32)

    if K <= tk:
        # single-K-step fast path (QKV / FFN-up / any GEMM with K <= 1024)
        return pl.pallas_call(
            functools.partial(_linear_single_kernel, activation=activation),
            out_shape=jax.ShapeDtypeStruct((M, N), out_dtype),
            grid=(M // tm, N // tn),
            in_specs=[
                pl.BlockSpec((tm, K), lambda i, j: (i, 0)),
                pl.BlockSpec((K, tn), lambda i, j: (0, j)),
                pl.BlockSpec((1, tn), lambda i, j: (0, j)),
            ],
            out_specs=pl.BlockSpec((tm, tn), lambda i, j: (i, j)),
            compiler_params=pltpu.CompilerParams(
                dimension_semantics=("parallel", "parallel")),
        )(x, w, bias)

    # multi-K fallback: VMEM f32 accumulator, K is the reduction grid axis
    return pl.pallas_call(
        functools.partial(_linear_acc_kernel, activation=activation),
        out_shape=jax.ShapeDtypeStruct((M, N), out_dtype),
        grid=(M // tm, N // tn, K // tk),
        in_specs=[
            pl.BlockSpec((tm, tk), lambda i, j, k: (i, k)),
            pl.BlockSpec((tk, tn), lambda i, j, k: (k, j)),
            pl.BlockSpec((1, tn), lambda i, j, k: (0, j)),
        ],
        out_specs=pl.BlockSpec((tm, tn), lambda i, j, k: (i, j)),
        scratch_shapes=[pltpu.VMEM((tm, tn), jnp.float32)],
        compiler_params=pltpu.CompilerParams(
            dimension_semantics=("parallel", "parallel", "arbitrary")),
    )(x, w, bias)


# --------------------------------------------------------------------------
# fused linear + residual add + LayerNorm
# (used after attention output projection and FFN down projection; the
#  output feature dim N is kept untiled so LN sees complete rows)
# --------------------------------------------------------------------------
def _linear_res_ln_kernel(x_ref, w_ref, b_ref, r_ref, g_ref, beta_ref,
                          o_ref, acc_ref, *, eps):
    @pl.when(pl.program_id(1) == 0)
    def _():
        acc_ref[...] = jnp.zeros_like(acc_ref)

    acc_ref[...] += jnp.dot(x_ref[...], w_ref[...],
                            preferred_element_type=jnp.float32)

    @pl.when(pl.program_id(1) == pl.num_programs(1) - 1)
    def _():
        y = acc_ref[...] + b_ref[...] + r_ref[...].astype(jnp.float32)
        o_ref[...] = _ln_core(y, g_ref[...], beta_ref[...], eps).astype(o_ref.dtype)


def pallas_linear_residual_ln(x, w, b, residual, g, beta, eps=1e-12,
                              out_dtype=jnp.bfloat16, tm=1024, tk=1024):
    M, K = x.shape
    N = w.shape[1]
    tm = _pick_tile(M, tm, 8)
    tk = _pick_tile(K, tk, 128)
    vec = lambda v: v.reshape(1, N).astype(jnp.float32)
    return pl.pallas_call(
        functools.partial(_linear_res_ln_kernel, eps=eps),
        out_shape=jax.ShapeDtypeStruct((M, N), out_dtype),
        grid=(M // tm, K // tk),
        in_specs=[
            pl.BlockSpec((tm, tk), lambda i, k: (i, k)),
            pl.BlockSpec((tk, N), lambda i, k: (k, 0)),
            pl.BlockSpec((1, N), lambda i, k: (0, 0)),
            pl.BlockSpec((tm, N), lambda i, k: (i, 0)),
            pl.BlockSpec((1, N), lambda i, k: (0, 0)),
            pl.BlockSpec((1, N), lambda i, k: (0, 0)),
        ],
        out_specs=pl.BlockSpec((tm, N), lambda i, k: (i, 0)),
        scratch_shapes=[pltpu.VMEM((tm, N), jnp.float32)],
        compiler_params=pltpu.CompilerParams(
            dimension_semantics=("parallel", "arbitrary")),
    )(x, w, vec(b), residual, vec(g), vec(beta))


# --------------------------------------------------------------------------
# standalone LayerNorm (embedding LN), tiled along M
# --------------------------------------------------------------------------
def _layernorm_kernel(x_ref, g_ref, b_ref, o_ref, *, eps):
    x = x_ref[...].astype(jnp.float32)
    o_ref[...] = _ln_core(x, g_ref[...], b_ref[...], eps).astype(o_ref.dtype)


def pallas_layernorm(x, g, b, eps=1e-12, out_dtype=jnp.bfloat16, tm=1024):
    M, H = x.shape
    tm = _pick_tile(M, tm, 8)
    row_spec = pl.BlockSpec((tm, H), lambda i: (i, 0))
    vec_spec = pl.BlockSpec((1, H), lambda i: (0, 0))
    return pl.pallas_call(
        functools.partial(_layernorm_kernel, eps=eps),
        out_shape=jax.ShapeDtypeStruct((M, H), out_dtype),
        grid=(M // tm,),
        in_specs=[row_spec, vec_spec, vec_spec],
        out_specs=row_spec,
        compiler_params=pltpu.CompilerParams(dimension_semantics=("parallel",)),
    )(x, g.reshape(1, H).astype(jnp.float32), b.reshape(1, H).astype(jnp.float32))


# --------------------------------------------------------------------------
# multi-head attention: a block of heads per grid step, masked softmax
# (1/sqrt(dh) already folded into the Q projection weights)
# --------------------------------------------------------------------------
def _attention_kernel(q_ref, k_ref, v_ref, m_ref, o_ref):
    q = q_ref[...]                                   # (hpb, T, dh) bf16
    k = k_ref[...]
    v = v_ref[...]
    s = jnp.einsum('hqd,hkd->hqk', q, k,
                   preferred_element_type=jnp.float32)      # (hpb, T, T) f32
    s = s + m_ref[...]                               # (1, T) additive key mask
    s = s - jnp.max(s, axis=-1, keepdims=True)
    p = jnp.exp(s)
    inv = pl.reciprocal(jnp.sum(p, axis=-1, keepdims=True), approx=True)
    p = (p * inv).astype(v.dtype)
    ctx = jnp.einsum('hqk,hkd->hqd', p, v,
                     preferred_element_type=jnp.float32)    # (hpb, T, dh)
    o_ref[...] = ctx.astype(o_ref.dtype)


def pallas_attention(q, k, v, add_mask):
    """q, k, v: [B, nH, T, dh] bf16.  add_mask: [B, 1, T] additive (0 / -1e9)."""
    B, nH, T, dh = q.shape
    # heads per grid step: keep the f32 score tile modest and fill the MXU.
    hpb = nH
    while hpb > 1 and hpb * T * T * 4 > (8 << 20):
        hpb -= 1
    while nH % hpb != 0:
        hpb -= 1
    qkv_spec = pl.BlockSpec((None, hpb, T, dh), lambda b, h: (b, h, 0, 0))
    return pl.pallas_call(
        _attention_kernel,
        out_shape=jax.ShapeDtypeStruct((B, nH, T, dh), q.dtype),
        grid=(B, nH // hpb),
        in_specs=[
            qkv_spec, qkv_spec, qkv_spec,
            pl.BlockSpec((None, 1, T), lambda b, h: (b, 0, 0)),
        ],
        out_specs=qkv_spec,
        compiler_params=pltpu.CompilerParams(
            dimension_semantics=("parallel", "parallel")),
    )(q, k, v, add_mask)


# --------------------------------------------------------------------------
# fused pooler (tanh) + classification head on the [CLS] token
# --------------------------------------------------------------------------
def _pooler_head_kernel(cls_ref, pw_ref, pb_ref, fw_ref, fb_ref, o_ref):
    pooled = jnp.dot(cls_ref[...], pw_ref[...],
                     preferred_element_type=jnp.float32) + pb_ref[...]
    pooled = jnp.tanh(pooled)
    logits = jnp.dot(pooled.astype(fw_ref.dtype), fw_ref[...],
                     preferred_element_type=jnp.float32) + fb_ref[...]
    o_ref[...] = logits.astype(o_ref.dtype)


def pallas_pooler_head(cls, pool_w, pool_b, fc_w, fc_b):
    B, H = cls.shape
    C = fc_w.shape[1]
    full = lambda shape: pl.BlockSpec(shape, lambda i: tuple(0 for _ in shape))
    return pl.pallas_call(
        _pooler_head_kernel,
        out_shape=jax.ShapeDtypeStruct((B, C), jnp.float32),
        grid=(1,),
        in_specs=[full((B, H)), full((H, H)), full((1, H)),
                  full((H, C)), full((1, C))],
        out_specs=full((B, C)),
    )(cls, pool_w, pool_b.reshape(1, H).astype(jnp.float32),
      fc_w, fc_b.reshape(1, C).astype(jnp.float32))


# --------------------------------------------------------------------------
# Parameter initialization (deterministic, synthetic "pretrained" BERT)
# --------------------------------------------------------------------------
def init_bert_params(key, *, vocab_size, hidden, intermediate, n_layers,
                     max_pos, type_vocab, num_classes, n_heads):
    def nxt():
        nonlocal key
        key, sub = jax.random.split(key)
        return sub

    std = 0.02
    wdt = jnp.bfloat16                       # MXU-operand dtype
    scale = 1.0 / float(hidden // n_heads) ** 0.5
    p = {
        "word_emb": (jax.random.normal(nxt(), (vocab_size, hidden)) * std).astype(wdt),
        "pos_emb": (jax.random.normal(nxt(), (max_pos, hidden)) * std).astype(wdt),
        "type_emb": (jax.random.normal(nxt(), (type_vocab, hidden)) * std).astype(wdt),
        "emb_ln_g": jnp.ones((hidden,), jnp.float32),
        "emb_ln_b": jnp.zeros((hidden,), jnp.float32),
        "layers": [],
        "pool_w": (jax.random.normal(nxt(), (hidden, hidden)) * std).astype(wdt),
        "pool_b": jnp.zeros((hidden,), jnp.float32),
        # classification head: self.fc = nn.Linear(hidden_size, num_classes)
        "fc_w": (jax.random.normal(nxt(), (hidden, num_classes)) * std).astype(wdt),
        "fc_b": jnp.zeros((num_classes,), jnp.float32),
    }
    for _ in range(n_layers):
        wq = jax.random.normal(nxt(), (hidden, hidden)) * std
        wk = jax.random.normal(nxt(), (hidden, hidden)) * std
        wv = jax.random.normal(nxt(), (hidden, hidden)) * std
        # fused QKV projection; 1/sqrt(dh) attention scale folded into Q slice
        wqkv = jnp.concatenate([wq * scale, wk, wv], axis=1).astype(wdt)
        p["layers"].append({
            "wqkv": wqkv,
            "bqkv": jnp.zeros((3 * hidden,), jnp.float32),
            "wo": (jax.random.normal(nxt(), (hidden, hidden)) * std).astype(wdt),
            "bo": jnp.zeros((hidden,), jnp.float32),
            "ln1_g": jnp.ones((hidden,), jnp.float32),
            "ln1_b": jnp.zeros((hidden,), jnp.float32),
            "w1": (jax.random.normal(nxt(), (hidden, intermediate)) * std).astype(wdt),
            "b1": jnp.zeros((intermediate,), jnp.float32),
            "w2": (jax.random.normal(nxt(), (intermediate, hidden)) * std).astype(wdt),
            "b2": jnp.zeros((hidden,), jnp.float32),
            "ln2_g": jnp.ones((hidden,), jnp.float32),
            "ln2_b": jnp.zeros((hidden,), jnp.float32),
        })
    return p


# --------------------------------------------------------------------------
# Forward pass: BertModel(input_ids, attention_mask) -> pooled -> fc
# --------------------------------------------------------------------------
def bert_for_classification_forward(params, input_ids, attention_mask, *, n_heads):
    B, T = input_ids.shape
    H = params["word_emb"].shape[1]
    dh = H // n_heads

    # ---- embeddings (gathers are XLA glue; LayerNorm is Pallas) ----
    # TODO(synk): token_type_ids hard-coded to type 0 (as in single-segment use).
    emb = (params["word_emb"][input_ids].astype(jnp.float32)
           + params["pos_emb"][jnp.arange(T)][None, :, :].astype(jnp.float32)
           + params["type_emb"][0][None, None, :].astype(jnp.float32))      # [B,T,H]
    x = pallas_layernorm(emb.reshape(B * T, H),
                         params["emb_ln_g"], params["emb_ln_b"])            # bf16 [B*T,H]

    # additive attention mask: 0 for real tokens, -1e9 for PAD
    add_mask = ((1.0 - attention_mask.astype(jnp.float32)) * -1e9)[:, None, :]  # [B,1,T]

    for lyr in params["layers"]:
        # ---- self-attention (fused QKV GEMM, scale pre-folded into Wq) ----
        qkv = pallas_linear(x, lyr["wqkv"], lyr["bqkv"])                    # [B*T, 3H]
        qkv = qkv.reshape(B, T, 3, n_heads, dh).transpose(2, 0, 3, 1, 4)    # [3,B,nH,T,dh]
        ctx = pallas_attention(qkv[0], qkv[1], qkv[2], add_mask)            # [B,nH,T,dh]
        ctx = ctx.transpose(0, 2, 1, 3).reshape(B * T, H)
        # output projection fused with residual add + LayerNorm
        x = pallas_linear_residual_ln(ctx, lyr["wo"], lyr["bo"], x,
                                      lyr["ln1_g"], lyr["ln1_b"])
        # ---- feed-forward ----
        h = pallas_linear(x, lyr["w1"], lyr["b1"], activation="gelu")
        # down projection fused with residual add + LayerNorm
        x = pallas_linear_residual_ln(h, lyr["w2"], lyr["b2"], x,
                                      lyr["ln2_g"], lyr["ln2_b"])

    cls = x.reshape(B, T, H)[:, 0, :]                                       # [CLS]
    logits = pallas_pooler_head(cls, params["pool_w"], params["pool_b"],
                                params["fc_w"], params["fc_b"])             # f32 [B,C]
    return logits


# --------------------------------------------------------------------------
if __name__ == "__main__":
    # small synthetic config consistent with the module (hidden scaled down from 1024)
    B, T = 2, 8
    H, n_heads, intermediate, n_layers = 32, 4, 64, 2
    vocab, max_pos, type_vocab, num_classes = 50, 16, 2, 3

    key = jax.random.PRNGKey(0)
    pkey, ikey = jax.random.split(key)
    params = init_bert_params(pkey, vocab_size=vocab, hidden=H,
                              intermediate=intermediate, n_layers=n_layers,
                              max_pos=max_pos, type_vocab=type_vocab,
                              num_classes=num_classes, n_heads=n_heads)

    input_ids = jax.random.randint(ikey, (B, T), 0, vocab, dtype=jnp.int32)
    attention_mask = jnp.ones((B, T), dtype=jnp.int32).at[1, 6:].set(0)  # PAD tail on seq 1

    fwd = jax.jit(functools.partial(bert_for_classification_forward, n_heads=n_heads))
    logits = jax.block_until_ready(fwd(params, input_ids, attention_mask))
    assert logits.shape == (B, num_classes) and logits.dtype == jnp.float32
    print("KERNEL_OK")
</pallas_src>

<mosaic_0001>
module attributes {stable_mosaic.version = 11 : i64} {
  func.func @_layernorm_kernel(%arg0: i32, %arg1: memref<16x32xf32, #tpu.memory_space<vmem>>, %arg2: memref<1x32xf32, #tpu.memory_space<vmem>>, %arg3: memref<1x32xf32, #tpu.memory_space<vmem>>, %arg4: memref<16x32xbf16, #tpu.memory_space<vmem>>) attributes {dimension_semantics = [#tpu.dimension_semantics<parallel>], iteration_bounds = array<i64: 1>, scalar_prefetch = 0 : i64, scratch_operands = 0 : i64, tpu.core_type = #tpu.core_type<tc>, window_params = [{transform_indices = @transform_0, window_bounds = array<i64: 16, 32>}, {pipeline_mode = #tpu.pipeline_mode<synchronous>, transform_indices = @transform_1, window_bounds = array<i64: 1, 32>}, {pipeline_mode = #tpu.pipeline_mode<synchronous>, transform_indices = @transform_2, window_bounds = array<i64: 1, 32>}, {transform_indices = @transform_3, window_bounds = array<i64: 16, 32>}]} {
    %c0 = arith.constant 0 : index
    %c0_0 = arith.constant 0 : index
    %0 = vector.load %arg1[%c0, %c0_0] : memref<16x32xf32, #tpu.memory_space<vmem>>, vector<16x32xf32>
    %c0_1 = arith.constant 0 : index
    %c0_2 = arith.constant 0 : index
    %1 = vector.load %arg2[%c0_1, %c0_2] : memref<1x32xf32, #tpu.memory_space<vmem>>, vector<1x32xf32>
    %c0_3 = arith.constant 0 : index
    %c0_4 = arith.constant 0 : index
    %2 = vector.load %arg3[%c0_3, %c0_4] : memref<1x32xf32, #tpu.memory_space<vmem>>, vector<1x32xf32>
    %cst = arith.constant dense<0.000000e+00> : vector<16xf32>
    %3 = vector.multi_reduction <add>, %0, %cst [1] : vector<16x32xf32> to vector<16xf32>
    %4 = vector.shape_cast %3 : vector<16xf32> to vector<16x1xf32>
    %cst_5 = arith.constant 3.200000e+01 : f32
    %5 = vector.broadcast %cst_5 : f32 to vector<16x1xf32>
    %6 = arith.divf %4, %5 : vector<16x1xf32>
    %7 = vector.broadcast %6 : vector<16x1xf32> to vector<16x32xf32>
    %8 = arith.subf %0, %7 : vector<16x32xf32>
    %9 = arith.mulf %8, %8 : vector<16x32xf32>
    %cst_6 = arith.constant dense<0.000000e+00> : vector<16xf32>
    %10 = vector.multi_reduction <add>, %9, %cst_6 [1] : vector<16x32xf32> to vector<16xf32>
    %11 = vector.shape_cast %10 : vector<16xf32> to vector<16x1xf32>
    %cst_7 = arith.constant 3.200000e+01 : f32
    %12 = vector.broadcast %cst_7 : f32 to vector<16x1xf32>
    %13 = arith.divf %11, %12 : vector<16x1xf32>
    %cst_8 = arith.constant 9.99999996E-13 : f32
    %14 = vector.broadcast %cst_8 : f32 to vector<16x1xf32>
    %15 = arith.addf %13, %14 : vector<16x1xf32>
    %16 = math.rsqrt %15 : vector<16x1xf32>
    %17 = vector.broadcast %16 : vector<16x1xf32> to vector<16x32xf32>
    %18 = arith.mulf %8, %17 : vector<16x32xf32>
    %19 = vector.broadcast %1 : vector<1x32xf32> to vector<16x32xf32>
    %20 = arith.mulf %18, %19 : vector<16x32xf32>
    %21 = vector.broadcast %2 : vector<1x32xf32> to vector<16x32xf32>
    %22 = arith.addf %20, %21 : vector<16x32xf32>
    %23 = arith.truncf %22 : vector<16x32xf32> to vector<16x32xbf16>
    %c0_9 = arith.constant 0 : index
    %c0_10 = arith.constant 0 : index
    %24 = vector.load %arg4[%c0_9, %c0_10] : memref<16x32xbf16, #tpu.memory_space<vmem>>, vector<16x32xbf16>
    tpu.vector_store %arg4[%c0_9, %c0_10], %23 {strides = array<i32>} : memref<16x32xbf16, #tpu.memory_space<vmem>>, vector<16x32xbf16>,
    return
  }
  func.func @transform_0(%arg0: i32) -> (i32, i32) {
    %c0_i32 = arith.constant 0 : i32
    %c0_i32_0 = arith.constant 0 : i32
    return %arg0, %c0_i32 : i32, i32
  }
  func.func @transform_1(%arg0: i32) -> (i32, i32) {
    %c0_i32 = arith.constant 0 : i32
    %c0_i32_0 = arith.constant 0 : i32
    %c0_i32_1 = arith.constant 0 : i32
    return %c0_i32, %c0_i32_0 : i32, i32
  }
  func.func @transform_2(%arg0: i32) -> (i32, i32) {
    %c0_i32 = arith.constant 0 : i32
    %c0_i32_0 = arith.constant 0 : i32
    %c0_i32_1 = arith.constant 0 : i32
    return %c0_i32, %c0_i32_0 : i32, i32
  }
  func.func @transform_3(%arg0: i32) -> (i32, i32) {
    %c0_i32 = arith.constant 0 : i32
    %c0_i32_0 = arith.constant 0 : i32
    return %arg0, %c0_i32 : i32, i32
  }
}

module attributes {stable_mosaic.version = 11 : i64} {
  func.func @_linear_single_kernel(%arg0: i32, %arg1: i32, %arg2: memref<16x32xbf16, #tpu.memory_space<vmem>>, %arg3: memref<32x96xbf16, #tpu.memory_space<vmem>>, %arg4: memref<1x96xf32, #tpu.memory_space<vmem>>, %arg5: memref<16x96xbf16, #tpu.memory_space<vmem>>) attributes {dimension_semantics = [#tpu.dimension_semantics<parallel>, #tpu.dimension_semantics<parallel>], iteration_bounds = array<i64: 1, 1>, scalar_prefetch = 0 : i64, scratch_operands = 0 : i64, tpu.core_type = #tpu.core_type<tc>, window_params = [{transform_indices = @transform_0, window_bounds = array<i64: 16, 32>}, {transform_indices = @transform_1, window_bounds = array<i64: 32, 96>}, {transform_indices = @transform_2, window_bounds = array<i64: 1, 96>}, {transform_indices = @transform_3, window_bounds = array<i64: 16, 96>}]} {
    %c0 = arith.constant 0 : index
    %c0_0 = arith.constant 0 : index
    %0 = vector.load %arg2[%c0, %c0_0] : memref<16x32xbf16, #tpu.memory_space<vmem>>, vector<16x32xbf16>
    %c0_1 = arith.constant 0 : index
    %c0_2 = arith.constant 0 : index
    %1 = vector.load %arg3[%c0_1, %c0_2] : memref<32x96xbf16, #tpu.memory_space<vmem>>, vector<32x96xbf16>
    %cst = arith.constant dense<0.000000e+00> : vector<16x96xf32>
    %2 = tpu.matmul %0, %1, %cst {dimension_numbers = #tpu.dot_dimension_numbers<[1], [0], [0], [1], [0, 0, 1, 1], [], []>} : vector<16x32xbf16>, vector<32x96xbf16>, vector<16x96xf32> -> vector<16x96xf32>
    %c0_3 = arith.constant 0 : index
    %c0_4 = arith.constant 0 : index
    %3 = vector.load %arg4[%c0_3, %c0_4] : memref<1x96xf32, #tpu.memory_space<vmem>>, vector<1x96xf32>
    %4 = vector.broadcast %3 : vector<1x96xf32> to vector<16x96xf32>
    %5 = arith.addf %2, %4 : vector<16x96xf32>
    %6 = arith.truncf %5 : vector<16x96xf32> to vector<16x96xbf16>
    %c0_5 = arith.constant 0 : index
    %c0_6 = arith.constant 0 : index
    %7 = vector.load %arg5[%c0_5, %c0_6] : memref<16x96xbf16, #tpu.memory_space<vmem>>, vector<16x96xbf16>
    tpu.vector_store %arg5[%c0_5, %c0_6], %6 {strides = array<i32>} : memref<16x96xbf16, #tpu.memory_space<vmem>>, vector<16x96xbf16>,
    return
  }
  func.func @transform_0(%arg0: i32, %arg1: i32) -> (i32, i32) {
    %c0_i32 = arith.constant 0 : i32
    %c0_i32_0 = arith.constant 0 : i32
    return %arg0, %c0_i32 : i32, i32
  }
  func.func @transform_1(%arg0: i32, %arg1: i32) -> (i32, i32) {
    %c0_i32 = arith.constant 0 : i32
    %c0_i32_0 = arith.constant 0 : i32
    return %c0_i32, %arg1 : i32, i32
  }
  func.func @transform_2(%arg0: i32, %arg1: i32) -> (i32, i32) {
    %c0_i32 = arith.constant 0 : i32
    %c0_i32_0 = arith.constant 0 : i32
    return %c0_i32, %arg1 : i32, i32
  }
  func.func @transform_3(%arg0: i32, %arg1: i32) -> (i32, i32) {
    %c0_i32 = arith.constant 0 : i32
    return %arg0, %arg1 : i32, i32
  }
}

module attributes {stable_mosaic.version = 11 : i64} {
  func.func @_attention_kernel(%arg0: i32, %arg1: i32, %arg2: memref<1x4x8x8xbf16, #tpu.memory_space<vmem>>, %arg3: memref<1x4x8x8xbf16, #tpu.memory_space<vmem>>, %arg4: memref<1x4x8x8xbf16, #tpu.memory_space<vmem>>, %arg5: memref<1x1x8xf32, #tpu.memory_space<vmem>>, %arg6: memref<1x4x8x8xbf16, #tpu.memory_space<vmem>>) attributes {dimension_semantics = [#tpu.dimension_semantics<parallel>, #tpu.dimension_semantics<parallel>], iteration_bounds = array<i64: 2, 1>, scalar_prefetch = 0 : i64, scratch_operands = 0 : i64, tpu.core_type = #tpu.core_type<tc>, window_params = [{transform_indices = @transform_0, window_bounds = array<i64: 1, 4, 8, 8>}, {transform_indices = @transform_1, window_bounds = array<i64: 1, 4, 8, 8>}, {transform_indices = @transform_2, window_bounds = array<i64: 1, 4, 8, 8>}, {transform_indices = @transform_3, window_bounds = array<i64: 1, 1, 8>}, {transform_indices = @transform_4, window_bounds = array<i64: 1, 4, 8, 8>}]} {
    %c0 = arith.constant 0 : index
    %c0_0 = arith.constant 0 : index
    %c0_1 = arith.constant 0 : index
    %c0_2 = arith.constant 0 : index
    %0 = vector.load %arg2[%c0, %c0_0, %c0_1, %c0_2] : memref<1x4x8x8xbf16, #tpu.memory_space<vmem>>, vector<1x4x8x8xbf16>
    %1 = vector.shape_cast %0 : vector<1x4x8x8xbf16> to vector<4x8x8xbf16>
    %c0_3 = arith.constant 0 : index
    %c0_4 = arith.constant 0 : index
    %c0_5 = arith.constant 0 : index
    %c0_6 = arith.constant 0 : index
    %2 = vector.load %arg3[%c0_3, %c0_4, %c0_5, %c0_6] : memref<1x4x8x8xbf16, #tpu.memory_space<vmem>>, vector<1x4x8x8xbf16>
    %3 = vector.shape_cast %2 : vector<1x4x8x8xbf16> to vector<4x8x8xbf16>
    %c0_7 = arith.constant 0 : index
    %c0_8 = arith.constant 0 : index
    %c0_9 = arith.constant 0 : index
    %c0_10 = arith.constant 0 : index
    %4 = vector.load %arg4[%c0_7, %c0_8, %c0_9, %c0_10] : memref<1x4x8x8xbf16, #tpu.memory_space<vmem>>, vector<1x4x8x8xbf16>
    %5 = vector.shape_cast %4 : vector<1x4x8x8xbf16> to vector<4x8x8xbf16>
    "tpu.trace_start"() <{level = 10 : i32, message = "hqd,hkd->hqk"}> : () -> ()
    %cst = arith.constant dense<0.000000e+00> : vector<4x8x8xf32>
    %6 = tpu.matmul %1, %3, %cst {dimension_numbers = #tpu.dot_dimension_numbers<[2], [2], [1], [1], [0, 0, 0, 1, 1, 1], [0], [0]>} : vector<4x8x8xbf16>, vector<4x8x8xbf16>, vector<4x8x8xf32> -> vector<4x8x8xf32>
    "tpu.trace_stop"() : () -> ()
    %c0_11 = arith.constant 0 : index
    %c0_12 = arith.constant 0 : index
    %c0_13 = arith.constant 0 : index
    %7 = vector.load %arg5[%c0_11, %c0_12, %c0_13] : memref<1x1x8xf32, #tpu.memory_space<vmem>>, vector<1x1x8xf32>
    %8 = vector.shape_cast %7 : vector<1x1x8xf32> to vector<1x8xf32>
    %9 = vector.shape_cast %8 : vector<1x8xf32> to vector<1x1x8xf32>
    %10 = vector.broadcast %9 : vector<1x1x8xf32> to vector<4x8x8xf32>
    %11 = arith.addf %6, %10 : vector<4x8x8xf32>
    %cst_14 = arith.constant dense<0xFF800000> : vector<4x8xf32>
    %12 = vector.multi_reduction <maximumf>, %11, %cst_14 [2] : vector<4x8x8xf32> to vector<4x8xf32>
    %13 = vector.shape_cast %12 : vector<4x8xf32> to vector<4x8x1xf32>
    %14 = vector.broadcast %13 : vector<4x8x1xf32> to vector<4x8x8xf32>
    %15 = arith.subf %11, %14 : vector<4x8x8xf32>
    %16 = math.exp %15 : vector<4x8x8xf32>
    %cst_15 = arith.constant dense<0.000000e+00> : vector<4x8xf32>
    %17 = vector.multi_reduction <add>, %16, %cst_15 [2] : vector<4x8x8xf32> to vector<4x8xf32>
    %18 = vector.shape_cast %17 : vector<4x8xf32> to vector<4x8x1xf32>
    %19 = tpu.reciprocal %18 {approx = true} : vector<4x8x1xf32> -> vector<4x8x1xf32>
    %20 = vector.broadcast %19 : vector<4x8x1xf32> to vector<4x8x8xf32>
    %21 = arith.mulf %16, %20 : vector<4x8x8xf32>
    %22 = arith.truncf %21 : vector<4x8x8xf32> to vector<4x8x8xbf16>
    "tpu.trace_start"() <{level = 10 : i32, message = "hqk,hkd->hqd"}> : () -> ()
    %cst_16 = arith.constant dense<0.000000e+00> : vector<4x8x8xf32>
    %23 = tpu.matmul %22, %5, %cst_16 {dimension_numbers = #tpu.dot_dimension_numbers<[2], [1], [1], [2], [0, 0, 0, 1, 1, 2], [0], [0]>} : vector<4x8x8xbf16>, vector<4x8x8xbf16>, vector<4x8x8xf32> -> vector<4x8x8xf32>
    "tpu.trace_stop"() : () -> ()
    %24 = arith.truncf %23 : vector<4x8x8xf32> to vector<4x8x8xbf16>
    %c0_17 = arith.constant 0 : index
    %c0_18 = arith.constant 0 : index
    %c0_19 = arith.constant 0 : index
    %c0_20 = arith.constant 0 : index
    %25 = vector.load %arg6[%c0_17, %c0_18, %c0_19, %c0_20] : memref<1x4x8x8xbf16, #tpu.memory_space<vmem>>, vector<1x4x8x8xbf16>
    %26 = vector.shape_cast %25 : vector<1x4x8x8xbf16> to vector<4x8x8xbf16>
    %27 = vector.shape_cast %24 : vector<4x8x8xbf16> to vector<1x4x8x8xbf16>
    tpu.vector_store %arg6[%c0_17, %c0_18, %c0_19, %c0_20], %27 {strides = array<i32>} : memref<1x4x8x8xbf16, #tpu.memory_space<vmem>>, vector<1x4x8x8xbf16>,
    return
  }
  func.func @transform_0(%arg0: i32, %arg1: i32) -> (i32, i32, i32, i32) {
    %c0_i32 = arith.constant 0 : i32
    %c0_i32_0 = arith.constant 0 : i32
    %c0_i32_1 = arith.constant 0 : i32
    return %arg0, %arg1, %c0_i32, %c0_i32_0 : i32, i32, i32, i32
  }
  func.func @transform_1(%arg0: i32, %arg1: i32) -> (i32, i32, i32, i32) {
    %c0_i32 = arith.constant 0 : i32
    %c0_i32_0 = arith.constant 0 : i32
    %c0_i32_1 = arith.constant 0 : i32
    return %arg0, %arg1, %c0_i32, %c0_i32_0 : i32, i32, i32, i32
  }
  func.func @transform_2(%arg0: i32, %arg1: i32) -> (i32, i32, i32, i32) {
    %c0_i32 = arith.constant 0 : i32
    %c0_i32_0 = arith.constant 0 : i32
    %c0_i32_1 = arith.constant 0 : i32
    return %arg0, %arg1, %c0_i32, %c0_i32_0 : i32, i32, i32, i32
  }
  func.func @transform_3(%arg0: i32, %arg1: i32) -> (i32, i32, i32) {
    %c0_i32 = arith.constant 0 : i32
    %c0_i32_0 = arith.constant 0 : i32
    %c0_i32_1 = arith.constant 0 : i32
    return %arg0, %c0_i32, %c0_i32_0 : i32, i32, i32
  }
  func.func @transform_4(%arg0: i32, %arg1: i32) -> (i32, i32, i32, i32) {
    %c0_i32 = arith.constant 0 : i32
    %c0_i32_0 = arith.constant 0 : i32
    %c0_i32_1 = arith.constant 0 : i32
    return %arg0, %arg1, %c0_i32, %c0_i32_0 : i32, i32, i32, i32
  }
}

module attributes {stable_mosaic.version = 11 : i64} {
  func.func @_linear_single_kernel(%arg0: i32, %arg1: i32, %arg2: memref<16x32xbf16, #tpu.memory_space<vmem>>, %arg3: memref<32x64xbf16, #tpu.memory_space<vmem>>, %arg4: memref<1x64xf32, #tpu.memory_space<vmem>>, %arg5: memref<16x64xbf16, #tpu.memory_space<vmem>>) attributes {dimension_semantics = [#tpu.dimension_semantics<parallel>, #tpu.dimension_semantics<parallel>], iteration_bounds = array<i64: 1, 1>, scalar_prefetch = 0 : i64, scratch_operands = 0 : i64, tpu.core_type = #tpu.core_type<tc>, window_params = [{transform_indices = @transform_0, window_bounds = array<i64: 16, 32>}, {transform_indices = @transform_1, window_bounds = array<i64: 32, 64>}, {transform_indices = @transform_2, window_bounds = array<i64: 1, 64>}, {transform_indices = @transform_3, window_bounds = array<i64: 16, 64>}]} {
    %c0 = arith.constant 0 : index
    %c0_0 = arith.constant 0 : index
    %0 = vector.load %arg2[%c0, %c0_0] : memref<16x32xbf16, #tpu.memory_space<vmem>>, vector<16x32xbf16>
    %c0_1 = arith.constant 0 : index
    %c0_2 = arith.constant 0 : index
    %1 = vector.load %arg3[%c0_1, %c0_2] : memref<32x64xbf16, #tpu.memory_space<vmem>>, vector<32x64xbf16>
    %cst = arith.constant dense<0.000000e+00> : vector<16x64xf32>
    %2 = tpu.matmul %0, %1, %cst {dimension_numbers = #tpu.dot_dimension_numbers<[1], [0], [0], [1], [0, 0, 1, 1], [], []>} : vector<16x32xbf16>, vector<32x64xbf16>, vector<16x64xf32> -> vector<16x64xf32>
    %c0_3 = arith.constant 0 : index
    %c0_4 = arith.constant 0 : index
    %3 = vector.load %arg4[%c0_3, %c0_4] : memref<1x64xf32, #tpu.memory_space<vmem>>, vector<1x64xf32>
    %4 = vector.broadcast %3 : vector<1x64xf32> to vector<16x64xf32>
    %5 = arith.addf %2, %4 : vector<16x64xf32>
    %cst_5 = arith.constant 5.000000e-01 : f32
    %6 = vector.broadcast %cst_5 : f32 to vector<16x64xf32>
    %7 = arith.mulf %6, %5 : vector<16x64xf32>
    %cst_6 = arith.constant 4.471500e-02 : f32
    %8 = vector.broadcast %cst_6 : f32 to vector<16x64xf32>
    %9 = arith.mulf %8, %5 : vector<16x64xf32>
    %10 = arith.mulf %9, %5 : vector<16x64xf32>
    %11 = arith.mulf %10, %5 : vector<16x64xf32>
    %12 = arith.addf %5, %11 : vector<16x64xf32>
    %cst_7 = arith.constant 0.797884583 : f32
    %13 = vector.broadcast %cst_7 : f32 to vector<16x64xf32>
    %14 = arith.mulf %13, %12 : vector<16x64xf32>
    %15 = math.tanh %14 : vector<16x64xf32>
    %cst_8 = arith.constant 1.000000e+00 : f32
    %16 = vector.broadcast %cst_8 : f32 to vector<16x64xf32>
    %17 = arith.addf %16, %15 : vector<16x64xf32>
    %18 = arith.mulf %7, %17 : vector<16x64xf32>
    %19 = arith.truncf %18 : vector<16x64xf32> to vector<16x64xbf16>
    %c0_9 = arith.constant 0 : index
    %c0_10 = arith.constant 0 : index
    %20 = vector.load %arg5[%c0_9, %c0_10] : memref<16x64xbf16, #tpu.memory_space<vmem>>, vector<16x64xbf16>
    tpu.vector_store %arg5[%c0_9, %c0_10], %19 {strides = array<i32>} : memref<16x64xbf16, #tpu.memory_space<vmem>>, vector<16x64xbf16>,
    return
  }
  func.func @transform_0(%arg0: i32, %arg1: i32) -> (i32, i32) {
    %c0_i32 = arith.constant 0 : i32
    %c0_i32_0 = arith.constant 0 : i32
    return %arg0, %c0_i32 : i32, i32
  }
  func.func @transform_1(%arg0: i32, %arg1: i32) -> (i32, i32) {
    %c0_i32 = arith.constant 0 : i32
    %c0_i32_0 = arith.constant 0 : i32
    return %c0_i32, %arg1 : i32, i32
  }
  func.func @transform_2(%arg0: i32, %arg1: i32) -> (i32, i32) {
    %c0_i32 = arith.constant 0 : i32
    %c0_i32_0 = arith.constant 0 : i32
    return %c0_i32, %arg1 : i32, i32
  }
  func.func @transform_3(%arg0: i32, %arg1: i32) -> (i32, i32) {
    %c0_i32 = arith.constant 0 : i32
    return %arg0, %arg1 : i32, i32
  }
}

module attributes {stable_mosaic.version = 11 : i64} {
  func.func @_linear_res_ln_kernel(%arg0: i32, %arg1: i32, %arg2: memref<16x32xbf16, #tpu.memory_space<vmem>>, %arg3: memref<32x32xbf16, #tpu.memory_space<vmem>>, %arg4: memref<1x32xf32, #tpu.memory_space<vmem>>, %arg5: memref<16x32xbf16, #tpu.memory_space<vmem>>, %arg6: memref<1x32xf32, #tpu.memory_space<vmem>>, %arg7: memref<1x32xf32, #tpu.memory_space<vmem>>, %arg8: memref<16x32xbf16, #tpu.memory_space<vmem>>, %arg9: memref<16x32xf32, #tpu.memory_space<vmem>>) attributes {dimension_semantics = [#tpu.dimension_semantics<parallel>, #tpu.dimension_semantics<arbitrary>], iteration_bounds = array<i64: 1, 1>, scalar_prefetch = 0 : i64, scratch_operands = 1 : i64, tpu.core_type = #tpu.core_type<tc>, window_params = [{transform_indices = @transform_0, window_bounds = array<i64: 16, 32>}, {transform_indices = @transform_1, window_bounds = array<i64: 32, 32>}, {pipeline_mode = #tpu.pipeline_mode<synchronous>, transform_indices = @transform_2, window_bounds = array<i64: 1, 32>}, {transform_indices = @transform_3, window_bounds = array<i64: 16, 32>}, {pipeline_mode = #tpu.pipeline_mode<synchronous>, transform_indices = @transform_4, window_bounds = array<i64: 1, 32>}, {pipeline_mode = #tpu.pipeline_mode<synchronous>, transform_indices = @transform_5, window_bounds = array<i64: 1, 32>}, {transform_indices = @transform_6, window_bounds = array<i64: 16, 32>}]} {
    %c0_i32 = arith.constant 0 : i32
    %0 = arith.cmpi eq, %arg1, %c0_i32 : i32
    %1 = arith.extui %0 : i1 to i32
    %c0_i32_0 = arith.constant 0 : i32
    %2 = arith.cmpi ne, %1, %c0_i32_0 : i32
    scf.if %2 {
      %cst_10 = arith.constant 0.000000e+00 : f32
      %12 = vector.broadcast %cst_10 : f32 to vector<16x32xf32>
      %c0_11 = arith.constant 0 : index
      %c0_12 = arith.constant 0 : index
      %13 = vector.load %arg9[%c0_11, %c0_12] : memref<16x32xf32, #tpu.memory_space<vmem>>, vector<16x32xf32>
      tpu.vector_store %arg9[%c0_11, %c0_12], %12 {strides = array<i32>} : memref<16x32xf32, #tpu.memory_space<vmem>>, vector<16x32xf32>,
    } else {
    }
    %c0 = arith.constant 0 : index
    %c0_1 = arith.constant 0 : index
    %3 = vector.load %arg9[%c0, %c0_1] : memref<16x32xf32, #tpu.memory_space<vmem>>, vector<16x32xf32>
    %c0_2 = arith.constant 0 : index
    %c0_3 = arith.constant 0 : index
    %4 = vector.load %arg2[%c0_2, %c0_3] : memref<16x32xbf16, #tpu.memory_space<vmem>>, vector<16x32xbf16>
    %c0_4 = arith.constant 0 : index
    %c0_5 = arith.constant 0 : index
    %5 = vector.load %arg3[%c0_4, %c0_5] : memref<32x32xbf16, #tpu.memory_space<vmem>>, vector<32x32xbf16>
    %cst = arith.constant dense<0.000000e+00> : vector<16x32xf32>
    %6 = tpu.matmul %4, %5, %cst {dimension_numbers = #tpu.dot_dimension_numbers<[1], [0], [0], [1], [0, 0, 1, 1], [], []>} : vector<16x32xbf16>, vector<32x32xbf16>, vector<16x32xf32> -> vector<16x32xf32>
    %7 = arith.addf %3, %6 : vector<16x32xf32>
    %c0_6 = arith.constant 0 : index
    %c0_7 = arith.constant 0 : index
    %8 = vector.load %arg9[%c0_6, %c0_7] : memref<16x32xf32, #tpu.memory_space<vmem>>, vector<16x32xf32>
    tpu.vector_store %arg9[%c0_6, %c0_7], %7 {strides = array<i32>} : memref<16x32xf32, #tpu.memory_space<vmem>>, vector<16x32xf32>,
    %c0_i32_8 = arith.constant 0 : i32
    %9 = arith.cmpi eq, %arg1, %c0_i32_8 : i32
    %10 = arith.extui %9 : i1 to i32
    %c0_i32_9 = arith.constant 0 : i32
    %11 = arith.cmpi ne, %10, %c0_i32_9 : i32
    scf.if %11 {
      %c0_10 = arith.constant 0 : index
      %c0_11 = arith.constant 0 : index
      %12 = vector.load %arg9[%c0_10, %c0_11] : memref<16x32xf32, #tpu.memory_space<vmem>>, vector<16x32xf32>
      %c0_12 = arith.constant 0 : index
      %c0_13 = arith.constant 0 : index
      %13 = vector.load %arg4[%c0_12, %c0_13] : memref<1x32xf32, #tpu.memory_space<vmem>>, vector<1x32xf32>
      %14 = vector.broadcast %13 : vector<1x32xf32> to vector<16x32xf32>
      %15 = arith.addf %12, %14 : vector<16x32xf32>
      %c0_14 = arith.constant 0 : index
      %c0_15 = arith.constant 0 : index
      %16 = vector.load %arg5[%c0_14, %c0_15] : memref<16x32xbf16, #tpu.memory_space<vmem>>, vector<16x32xbf16>
      %17 = arith.extf %16 : vector<16x32xbf16> to vector<16x32xf32>
      %18 = arith.addf %15, %17 : vector<16x32xf32>
      %c0_16 = arith.constant 0 : index
      %c0_17 = arith.constant 0 : index
      %19 = vector.load %arg6[%c0_16, %c0_17] : memref<1x32xf32, #tpu.memory_space<vmem>>, vector<1x32xf32>
      %c0_18 = arith.constant 0 : index
      %c0_19 = arith.constant 0 : index
      %20 = vector.load %arg7[%c0_18, %c0_19] : memref<1x32xf32, #tpu.memory_space<vmem>>, vector<1x32xf32>
      %cst_20 = arith.constant dense<0.000000e+00> : vector<16xf32>
      %21 = vector.multi_reduction <add>, %18, %cst_20 [1] : vector<16x32xf32> to vector<16xf32>
      %22 = vector.shape_cast %21 : vector<16xf32> to vector<16x1xf32>
      %cst_21 = arith.constant 3.200000e+01 : f32
      %23 = vector.broadcast %cst_21 : f32 to vector<16x1xf32>
      %24 = arith.divf %22, %23 : vector<16x1xf32>
      %25 = vector.broadcast %24 : vector<16x1xf32> to vector<16x32xf32>
      %26 = arith.subf %18, %25 : vector<16x32xf32>
      %27 = arith.mulf %26, %26 : vector<16x32xf32>
      %cst_22 = arith.constant dense<0.000000e+00> : vector<16xf32>
      %28 = vector.multi_reduction <add>, %27, %cst_22 [1] : vector<16x32xf32> to vector<16xf32>
      %29 = vector.shape_cast %28 : vector<16xf32> to vector<16x1xf32>
      %cst_23 = arith.constant 3.200000e+01 : f32
      %30 = vector.broadcast %cst_23 : f32 to vector<16x1xf32>
      %31 = arith.divf %29, %30 : vector<16x1xf32>
      %cst_24 = arith.constant 9.99999996E-13 : f32
      %32 = vector.broadcast %cst_24 : f32 to vector<16x1xf32>
      %33 = arith.addf %31, %32 : vector<16x1xf32>
      %34 = math.rsqrt %33 : vector<16x1xf32>
      %35 = vector.broadcast %34 : vector<16x1xf32> to vector<16x32xf32>
      %36 = arith.mulf %26, %35 : vector<16x32xf32>
      %37 = vector.broadcast %19 : vector<1x32xf32> to vector<16x32xf32>
      %38 = arith.mulf %36, %37 : vector<16x32xf32>
      %39 = vector.broadcast %20 : vector<1x32xf32> to vector<16x32xf32>
      %40 = arith.addf %38, %39 : vector<16x32xf32>
      %41 = arith.truncf %40 : vector<16x32xf32> to vector<16x32xbf16>
      %c0_25 = arith.constant 0 : index
      %c0_26 = arith.constant 0 : index
      %42 = vector.load %arg8[%c0_25, %c0_26] : memref<16x32xbf16, #tpu.memory_space<vmem>>, vector<16x32xbf16>
      tpu.vector_store %arg8[%c0_25, %c0_26], %41 {strides = array<i32>} : memref<16x32xbf16, #tpu.memory_space<vmem>>, vector<16x32xbf16>,
    } else {
    }
    return
  }
  func.func @transform_0(%arg0: i32, %arg1: i32) -> (i32, i32) {
    %c0_i32 = arith.constant 0 : i32
    return %arg0, %arg1 : i32, i32
  }
  func.func @transform_1(%arg0: i32, %arg1: i32) -> (i32, i32) {
    %c0_i32 = arith.constant 0 : i32
    %c0_i32_0 = arith.constant 0 : i32
    return %arg1, %c0_i32 : i32, i32
  }
  func.func @transform_2(%arg0: i32, %arg1: i32) -> (i32, i32) {
    %c0_i32 = arith.constant 0 : i32
    %c0_i32_0 = arith.constant 0 : i32
    %c0_i32_1 = arith.constant 0 : i32
    return %c0_i32, %c0_i32_0 : i32, i32
  }
  func.func @transform_3(%arg0: i32, %arg1: i32) -> (i32, i32) {
    %c0_i32 = arith.constant 0 : i32
    %c0_i32_0 = arith.constant 0 : i32
    return %arg0, %c0_i32 : i32, i32
  }
  func.func @transform_4(%arg0: i32, %arg1: i32) -> (i32, i32) {
    %c0_i32 = arith.constant 0 : i32
    %c0_i32_0 = arith.constant 0 : i32
    %c0_i32_1 = arith.constant 0 : i32
    return %c0_i32, %c0_i32_0 : i32, i32
  }
  func.func @transform_5(%arg0: i32, %arg1: i32) -> (i32, i32) {
    %c0_i32 = arith.constant 0 : i32
    %c0_i32_0 = arith.constant 0 : i32
    %c0_i32_1 = arith.constant 0 : i32
    return %c0_i32, %c0_i32_0 : i32, i32
  }
  func.func @transform_6(%arg0: i32, %arg1: i32) -> (i32, i32) {
    %c0_i32 = arith.constant 0 : i32
    %c0_i32_0 = arith.constant 0 : i32
    return %arg0, %c0_i32 : i32, i32
  }
}

module attributes {stable_mosaic.version = 11 : i64} {
  func.func @_linear_res_ln_kernel(%arg0: i32, %arg1: i32, %arg2: memref<16x64xbf16, #tpu.memory_space<vmem>>, %arg3: memref<64x32xbf16, #tpu.memory_space<vmem>>, %arg4: memref<1x32xf32, #tpu.memory_space<vmem>>, %arg5: memref<16x32xbf16, #tpu.memory_space<vmem>>, %arg6: memref<1x32xf32, #tpu.memory_space<vmem>>, %arg7: memref<1x32xf32, #tpu.memory_space<vmem>>, %arg8: memref<16x32xbf16, #tpu.memory_space<vmem>>, %arg9: memref<16x32xf32, #tpu.memory_space<vmem>>) attributes {dimension_semantics = [#tpu.dimension_semantics<parallel>, #tpu.dimension_semantics<arbitrary>], iteration_bounds = array<i64: 1, 1>, scalar_prefetch = 0 : i64, scratch_operands = 1 : i64, tpu.core_type = #tpu.core_type<tc>, window_params = [{transform_indices = @transform_0, window_bounds = array<i64: 16, 64>}, {transform_indices = @transform_1, window_bounds = array<i64: 64, 32>}, {pipeline_mode = #tpu.pipeline_mode<synchronous>, transform_indices = @transform_2, window_bounds = array<i64: 1, 32>}, {transform_indices = @transform_3, window_bounds = array<i64: 16, 32>}, {pipeline_mode = #tpu.pipeline_mode<synchronous>, transform_indices = @transform_4, window_bounds = array<i64: 1, 32>}, {pipeline_mode = #tpu.pipeline_mode<synchronous>, transform_indices = @transform_5, window_bounds = array<i64: 1, 32>}, {transform_indices = @transform_6, window_bounds = array<i64: 16, 32>}]} {
    %c0_i32 = arith.constant 0 : i32
    %0 = arith.cmpi eq, %arg1, %c0_i32 : i32
    %1 = arith.extui %0 : i1 to i32
    %c0_i32_0 = arith.constant 0 : i32
    %2 = arith.cmpi ne, %1, %c0_i32_0 : i32
    scf.if %2 {
      %cst_10 = arith.constant 0.000000e+00 : f32
      %12 = vector.broadcast %cst_10 : f32 to vector<16x32xf32>
      %c0_11 = arith.constant 0 : index
      %c0_12 = arith.constant 0 : index
      %13 = vector.load %arg9[%c0_11, %c0_12] : memref<16x32xf32, #tpu.memory_space<vmem>>, vector<16x32xf32>
      tpu.vector_store %arg9[%c0_11, %c0_12], %12 {strides = array<i32>} : memref<16x32xf32, #tpu.memory_space<vmem>>, vector<16x32xf32>,
    } else {
    }
    %c0 = arith.constant 0 : index
    %c0_1 = arith.constant 0 : index
    %3 = vector.load %arg9[%c0, %c0_1] : memref<16x32xf32, #tpu.memory_space<vmem>>, vector<16x32xf32>
    %c0_2 = arith.constant 0 : index
    %c0_3 = arith.constant 0 : index
    %4 = vector.load %arg2[%c0_2, %c0_3] : memref<16x64xbf16, #tpu.memory_space<vmem>>, vector<16x64xbf16>
    %c0_4 = arith.constant 0 : index
    %c0_5 = arith.constant 0 : index
    %5 = vector.load %arg3[%c0_4, %c0_5] : memref<64x32xbf16, #tpu.memory_space<vmem>>, vector<64x32xbf16>
    %cst = arith.constant dense<0.000000e+00> : vector<16x32xf32>
    %6 = tpu.matmul %4, %5, %cst {dimension_numbers = #tpu.dot_dimension_numbers<[1], [0], [0], [1], [0, 0, 1, 1], [], []>} : vector<16x64xbf16>, vector<64x32xbf16>, vector<16x32xf32> -> vector<16x32xf32>
    %7 = arith.addf %3, %6 : vector<16x32xf32>
    %c0_6 = arith.constant 0 : index
    %c0_7 = arith.constant 0 : index
    %8 = vector.load %arg9[%c0_6, %c0_7] : memref<16x32xf32, #tpu.memory_space<vmem>>, vector<16x32xf32>
    tpu.vector_store %arg9[%c0_6, %c0_7], %7 {strides = array<i32>} : memref<16x32xf32, #tpu.memory_space<vmem>>, vector<16x32xf32>,
    %c0_i32_8 = arith.constant 0 : i32
    %9 = arith.cmpi eq, %arg1, %c0_i32_8 : i32
    %10 = arith.extui %9 : i1 to i32
    %c0_i32_9 = arith.constant 0 : i32
    %11 = arith.cmpi ne, %10, %c0_i32_9 : i32
    scf.if %11 {
      %c0_10 = arith.constant 0 : index
      %c0_11 = arith.constant 0 : index
      %12 = vector.load %arg9[%c0_10, %c0_11] : memref<16x32xf32, #tpu.memory_space<vmem>>, vector<16x32xf32>
      %c0_12 = arith.constant 0 : index
      %c0_13 = arith.constant 0 : index
      %13 = vector.load %arg4[%c0_12, %c0_13] : memref<1x32xf32, #tpu.memory_space<vmem>>, vector<1x32xf32>
      %14 = vector.broadcast %13 : vector<1x32xf32> to vector<16x32xf32>
      %15 = arith.addf %12, %14 : vector<16x32xf32>
      %c0_14 = arith.constant 0 : index
      %c0_15 = arith.constant 0 : index
      %16 = vector.load %arg5[%c0_14, %c0_15] : memref<16x32xbf16, #tpu.memory_space<vmem>>, vector<16x32xbf16>
      %17 = arith.extf %16 : vector<16x32xbf16> to vector<16x32xf32>
      %18 = arith.addf %15, %17 : vector<16x32xf32>
      %c0_16 = arith.constant 0 : index
      %c0_17 = arith.constant 0 : index
      %19 = vector.load %arg6[%c0_16, %c0_17] : memref<1x32xf32, #tpu.memory_space<vmem>>, vector<1x32xf32>
      %c0_18 = arith.constant 0 : index
      %c0_19 = arith.constant 0 : index
      %20 = vector.load %arg7[%c0_18, %c0_19] : memref<1x32xf32, #tpu.memory_space<vmem>>, vector<1x32xf32>
      %cst_20 = arith.constant dense<0.000000e+00> : vector<16xf32>
      %21 = vector.multi_reduction <add>, %18, %cst_20 [1] : vector<16x32xf32> to vector<16xf32>
      %22 = vector.shape_cast %21 : vector<16xf32> to vector<16x1xf32>
      %cst_21 = arith.constant 3.200000e+01 : f32
      %23 = vector.broadcast %cst_21 : f32 to vector<16x1xf32>
      %24 = arith.divf %22, %23 : vector<16x1xf32>
      %25 = vector.broadcast %24 : vector<16x1xf32> to vector<16x32xf32>
      %26 = arith.subf %18, %25 : vector<16x32xf32>
      %27 = arith.mulf %26, %26 : vector<16x32xf32>
      %cst_22 = arith.constant dense<0.000000e+00> : vector<16xf32>
      %28 = vector.multi_reduction <add>, %27, %cst_22 [1] : vector<16x32xf32> to vector<16xf32>
      %29 = vector.shape_cast %28 : vector<16xf32> to vector<16x1xf32>
      %cst_23 = arith.constant 3.200000e+01 : f32
      %30 = vector.broadcast %cst_23 : f32 to vector<16x1xf32>
      %31 = arith.divf %29, %30 : vector<16x1xf32>
      %cst_24 = arith.constant 9.99999996E-13 : f32
      %32 = vector.broadcast %cst_24 : f32 to vector<16x1xf32>
      %33 = arith.addf %31, %32 : vector<16x1xf32>
      %34 = math.rsqrt %33 : vector<16x1xf32>
      %35 = vector.broadcast %34 : vector<16x1xf32> to vector<16x32xf32>
      %36 = arith.mulf %26, %35 : vector<16x32xf32>
      %37 = vector.broadcast %19 : vector<1x32xf32> to vector<16x32xf32>
      %38 = arith.mulf %36, %37 : vector<16x32xf32>
      %39 = vector.broadcast %20 : vector<1x32xf32> to vector<16x32xf32>
      %40 = arith.addf %38, %39 : vector<16x32xf32>
      %41 = arith.truncf %40 : vector<16x32xf32> to vector<16x32xbf16>
      %c0_25 = arith.constant 0 : index
      %c0_26 = arith.constant 0 : index
      %42 = vector.load %arg8[%c0_25, %c0_26] : memref<16x32xbf16, #tpu.memory_space<vmem>>, vector<16x32xbf16>
      tpu.vector_store %arg8[%c0_25, %c0_26], %41 {strides = array<i32>} : memref<16x32xbf16, #tpu.memory_space<vmem>>, vector<16x32xbf16>,
    } else {
    }
    return
  }
  func.func @transform_0(%arg0: i32, %arg1: i32) -> (i32, i32) {
    %c0_i32 = arith.constant 0 : i32
    return %arg0, %arg1 : i32, i32
  }
  func.func @transform_1(%arg0: i32, %arg1: i32) -> (i32, i32) {
    %c0_i32 = arith.constant 0 : i32
    %c0_i32_0 = arith.constant 0 : i32
    return %arg1, %c0_i32 : i32, i32
  }
  func.func @transform_2(%arg0: i32, %arg1: i32) -> (i32, i32) {
    %c0_i32 = arith.constant 0 : i32
    %c0_i32_0 = arith.constant 0 : i32
    %c0_i32_1 = arith.constant 0 : i32
    return %c0_i32, %c0_i32_0 : i32, i32
  }
  func.func @transform_3(%arg0: i32, %arg1: i32) -> (i32, i32) {
    %c0_i32 = arith.constant 0 : i32
    %c0_i32_0 = arith.constant 0 : i32
    return %arg0, %c0_i32 : i32, i32
  }
  func.func @transform_4(%arg0: i32, %arg1: i32) -> (i32, i32) {
    %c0_i32 = arith.constant 0 : i32
    %c0_i32_0 = arith.constant 0 : i32
    %c0_i32_1 = arith.constant 0 : i32
    return %c0_i32, %c0_i32_0 : i32, i32
  }
  func.func @transform_5(%arg0: i32, %arg1: i32) -> (i32, i32) {
    %c0_i32 = arith.constant 0 : i32
    %c0_i32_0 = arith.constant 0 : i32
    %c0_i32_1 = arith.constant 0 : i32
    return %c0_i32, %c0_i32_0 : i32, i32
  }
  func.func @transform_6(%arg0: i32, %arg1: i32) -> (i32, i32) {
    %c0_i32 = arith.constant 0 : i32
    %c0_i32_0 = arith.constant 0 : i32
    return %arg0, %c0_i32 : i32, i32
  }
}

module attributes {stable_mosaic.version = 11 : i64} {
  func.func @_pooler_head_kernel(%arg0: i32, %arg1: memref<2x32xbf16, #tpu.memory_space<vmem>>, %arg2: memref<32x32xbf16, #tpu.memory_space<vmem>>, %arg3: memref<1x32xf32, #tpu.memory_space<vmem>>, %arg4: memref<32x3xbf16, #tpu.memory_space<vmem>>, %arg5: memref<1x3xf32, #tpu.memory_space<vmem>>, %arg6: memref<2x3xf32, #tpu.memory_space<vmem>>) attributes {dimension_semantics = [#tpu.dimension_semantics<arbitrary>], iteration_bounds = array<i64: 1>, scalar_prefetch = 0 : i64, scratch_operands = 0 : i64, tpu.core_type = #tpu.core_type<tc>, window_params = [{pipeline_mode = #tpu.pipeline_mode<synchronous>, transform_indices = @transform_0, window_bounds = array<i64: 2, 32>}, {pipeline_mode = #tpu.pipeline_mode<synchronous>, transform_indices = @transform_1, window_bounds = array<i64: 32, 32>}, {pipeline_mode = #tpu.pipeline_mode<synchronous>, transform_indices = @transform_2, window_bounds = array<i64: 1, 32>}, {pipeline_mode = #tpu.pipeline_mode<synchronous>, transform_indices = @transform_3, window_bounds = array<i64: 32, 3>}, {pipeline_mode = #tpu.pipeline_mode<synchronous>, transform_indices = @transform_4, window_bounds = array<i64: 1, 3>}, {pipeline_mode = #tpu.pipeline_mode<synchronous>, transform_indices = @transform_5, window_bounds = array<i64: 2, 3>}]} {
    %c0 = arith.constant 0 : index
    %c0_0 = arith.constant 0 : index
    %0 = vector.load %arg1[%c0, %c0_0] : memref<2x32xbf16, #tpu.memory_space<vmem>>, vector<2x32xbf16>
    %c0_1 = arith.constant 0 : index
    %c0_2 = arith.constant 0 : index
    %1 = vector.load %arg2[%c0_1, %c0_2] : memref<32x32xbf16, #tpu.memory_space<vmem>>, vector<32x32xbf16>
    %cst = arith.constant dense<0.000000e+00> : vector<2x32xf32>
    %2 = tpu.matmul %0, %1, %cst {dimension_numbers = #tpu.dot_dimension_numbers<[1], [0], [0], [1], [0, 0, 1, 1], [], []>} : vector<2x32xbf16>, vector<32x32xbf16>, vector<2x32xf32> -> vector<2x32xf32>
    %c0_3 = arith.constant 0 : index
    %c0_4 = arith.constant 0 : index
    %3 = vector.load %arg3[%c0_3, %c0_4] : memref<1x32xf32, #tpu.memory_space<vmem>>, vector<1x32xf32>
    %4 = vector.broadcast %3 : vector<1x32xf32> to vector<2x32xf32>
    %5 = arith.addf %2, %4 : vector<2x32xf32>
    %6 = math.tanh %5 : vector<2x32xf32>
    %7 = arith.truncf %6 : vector<2x32xf32> to vector<2x32xbf16>
    %c0_5 = arith.constant 0 : index
    %c0_6 = arith.constant 0 : index
    %8 = vector.load %arg4[%c0_5, %c0_6] : memref<32x3xbf16, #tpu.memory_space<vmem>>, vector<32x3xbf16>
    %cst_7 = arith.constant dense<0.000000e+00> : vector<2x3xf32>
    %9 = tpu.matmul %7, %8, %cst_7 {dimension_numbers = #tpu.dot_dimension_numbers<[1], [0], [0], [1], [0, 0, 1, 1], [], []>} : vector<2x32xbf16>, vector<32x3xbf16>, vector<2x3xf32> -> vector<2x3xf32>
    %c0_8 = arith.constant 0 : index
    %c0_9 = arith.constant 0 : index
    %10 = vector.load %arg5[%c0_8, %c0_9] : memref<1x3xf32, #tpu.memory_space<vmem>>, vector<1x3xf32>
    %11 = vector.broadcast %10 : vector<1x3xf32> to vector<2x3xf32>
    %12 = arith.addf %9, %11 : vector<2x3xf32>
    %c0_10 = arith.constant 0 : index
    %c0_11 = arith.constant 0 : index
    %13 = vector.load %arg6[%c0_10, %c0_11] : memref<2x3xf32, #tpu.memory_space<vmem>>, vector<2x3xf32>
    tpu.vector_store %arg6[%c0_10, %c0_11], %12 {strides = array<i32>} : memref<2x3xf32, #tpu.memory_space<vmem>>, vector<2x3xf32>,
    return
  }
  func.func @transform_0(%arg0: i32) -> (i32, i32) {
    %c0_i32 = arith.constant 0 : i32
    %c0_i32_0 = arith.constant 0 : i32
    %c0_i32_1 = arith.constant 0 : i32
    return %c0_i32, %c0_i32_0 : i32, i32
  }
  func.func @transform_1(%arg0: i32) -> (i32, i32) {
    %c0_i32 = arith.constant 0 : i32
    %c0_i32_0 = arith.constant 0 : i32
    %c0_i32_1 = arith.constant 0 : i32
    return %c0_i32, %c0_i32_0 : i32, i32
  }
  func.func @transform_2(%arg0: i32) -> (i32, i32) {
    %c0_i32 = arith.constant 0 : i32
    %c0_i32_0 = arith.constant 0 : i32
    %c0_i32_1 = arith.constant 0 : i32
    return %c0_i32, %c0_i32_0 : i32, i32
  }
  func.func @transform_3(%arg0: i32) -> (i32, i32) {
    %c0_i32 = arith.constant 0 : i32
    %c0_i32_0 = arith.constant 0 : i32
    %c0_i32_1 = arith.constant 0 : i32
    return %c0_i32, %c0_i32_0 : i32, i32
  }
  func.func @transform_4(%arg0: i32) -> (i32, i32) {
    %c0_i32 = arith.constant 0 : i32
    %c0_i32_0 = arith.constant 0 : i32
    %c0_i32_1 = arith.constant 0 : i32
    return %c0_i32, %c0_i32_0 : i32, i32
  }
  func.func @transform_5(%arg0: i32) -> (i32, i32) {
    %c0_i32 = arith.constant 0 : i32
    %c0_i32_0 = arith.constant 0 : i32
    %c0_i32_1 = arith.constant 0 : i32
    return %c0_i32, %c0_i32_0 : i32, i32
  }
}

</mosaic_0001>

<bundles_post_ra>
// kernel: bert_for_classification_forward.12
= control target key start
LH: loop header
LB: loop body
LE: loop exit
PB: predicated region body
PF: predicated region fallthrough
CT: control target
= control target key end

     0   :  { %vm18_vm0 = vcmask 261120   ;;  %v98_v4 = vmov 32.0   ;;  %vm82_vm6 = vcmask 257024   ;;  %s141_s0 = inlined_call_operand.vmem [shape: f32[16,32], index: 0, kind: input, shape index: {}]   ;;  %s142_s1 = inlined_call_operand.vmem [shape: f32[1,32], index: 1, kind: input, shape index: {}]   ;;  %s143_s2 = inlined_call_operand.vmem [shape: f32[1,32], index: 2, kind: input, shape index: {}]   ;;  %s144_s3 = inlined_call_operand.vmem [shape: bf16[16,32], index: 3, kind: output, shape index: {}]  }
   0x1   :  { %v14_v0 = vld [vmem:[%s141_s0] sm:$0xff]  ;;  %v15_v2 = vld [vmem:[%s141_s0 + $0x8] sm:$0xff]  ;;  %92 = vrcp.f32 %v98_v4 }
   0x2   :  { %v19_v1 = vsel %vm18_vm0, %v14_v0, 0.0  ;;  %v22_v3 = vsel %vm18_vm0, %v15_v2, 0.0  ;;  %v90_v35 = vld [vmem:[%s142_s1] ss:$0 sm:$0xff] }
   0x3   :  { %20 = vadd.xlane.f32.xlu0 %v19_v1  ;;  %v91_v38 = vld [vmem:[%s143_s2] ss:$0 sm:$0xff] }
   0x7   :  { %v93_v5 = vpop.eup %92 }
   0x8   :  { %v26_v6 = vmul.f32 32.0, %v93_v5  ;;  %vm30_vm1 = vweird.f32 %v93_v5 }
   0xa   :  { %v27_v7 = vsub.f32 1.0, %v26_v6 }
   0xb   :  { %23 = vadd.xlane.f32.xlu0 %v22_v3 }
   0xc   :  { %v28_v8 = vmul.f32 %v93_v5, %v27_v7 }
   0xe   :  { %v29_v9 = vadd.f32 %v93_v5, %v28_v8 }
  0x10   :  { %v31_v10 = vsel %vm30_vm1, %v93_v5, %v29_v9 }
  0x76   :  { %v21_v11 = vpop.xlane.xlu0 %20 }
  0x77   :  { %v32_v12 = vmul.f32 %v31_v10, %v21_v11 }
  0x79   :  { %v34_v13 = vsub.f32 %v14_v0, %v32_v12 }
  0x7b   :  { %v36_v14 = vmul.f32 %v34_v13, %v34_v13 }
  0x7d   :  { %v38_v15 = vsel %vm18_vm0, %v36_v14, 0.0 }
  0x7e   :  { %39 = vadd.xlane.f32.xlu1 %v38_v15  ;;  %v24_v16 = vpop.xlane.xlu0 %23 }
  0x7f   :  { %v33_v17 = vmul.f32 %v31_v10, %v24_v16 }
  0x81   :  { %v35_v18 = vsub.f32 %v15_v2, %v33_v17 }
  0x83   :  { %v37_v19 = vmul.f32 %v35_v18, %v35_v18 }
  0x85   :  { %v41_v20 = vsel %vm18_vm0, %v37_v19, 0.0 }
  0x86   :  { %42 = vadd.xlane.f32.xlu1 %v41_v20 }
  0xf1   :  { %v40_v21 = vpop.xlane.xlu1 %39 }
  0xf2   :  { %v44_v22 = vmul.f32 %v40_v21, %v31_v10 }
  0xf4   :  { %v46_v23 = vadd.f32 1e-12, %v44_v22 }
  0xf6   :  { %94 = vrsqrt.f32 %v46_v23  ;;  %vm54_vm3 = vweird.f32 %v46_v23 }
  0xf9   :  { %v43_v24 = vpop.xlane.xlu1 %42 }
  0xfa   :  { %v45_v25 = vmul.f32 %v43_v24, %v31_v10 }
  0xfc   :  { %v95_v26 = vpop.eup %94  ;;  %v47_v27 = vadd.f32 1e-12, %v45_v25 }
  0xfd   :  { %v49_v28 = vmul.f32 %v95_v26, %v46_v23  ;;  %vm55_vm2 = vweird.f32 %v95_v26 }
  0xfe   :  { %96 = vrsqrt.f32 %v47_v27  ;;  %vm56_vm4 = vmor %vm54_vm3, %vm55_vm2  ;;  %vm64_vm7 = vweird.f32 %v47_v27 }
  0xff   :  { %v50_v29 = vmul.f32 %v95_v26, %v49_v28 }
 0x101   :  { %v51_v30 = vmul.f32 0.5, %v50_v29 }
 0x103   :  { %v52_v31 = vsub.f32 1.5, %v51_v30 }
 0x104   :  { %v97_v32 = vpop.eup %96 }
 0x105   :  { %v53_v33 = vmul.f32 %v95_v26, %v52_v31  ;;  %v59_v34 = vmul.f32 %v97_v32, %v47_v27  ;;  %vm65_vm5 = vweird.f32 %v97_v32 }
 0x106   :  { %vm66_vm8 = vmor %vm64_vm7, %vm65_vm5 }
 0x107   :  { %v57_v36 = vsel %vm56_vm4, %v95_v26, %v53_v33  ;;  %v60_v37 = vmul.f32 %v97_v32, %v59_v34 }
 0x108   :  { %v68_v39 = vmul.f32 %v57_v36, %v34_v13 }
 0x109   :  { %v61_v40 = vmul.f32 0.5, %v60_v37 }
 0x10a   :  { %v73_v41 = vmul.f32 %v90_v35, %v68_v39 }
 0x10b   :  { %v62_v42 = vsub.f32 1.5, %v61_v40 }
 0x10c   :  { %v78_v43 = vadd.f32 %v91_v38, %v73_v41 }
 0x10d   :  { %v63_v44 = vmul.f32 %v97_v32, %v62_v42 }
 0x10e   :  { %v80_v45 = vpack.c.bf16 %v78_v43, %v78_v43 }
 0x10f   :  { %v67_v46 = vsel %vm66_vm8, %v97_v32, %v63_v44 }
 0x110   :  { %83 = vst.msk [vmem:[%s144_s3] sm:$0xf] %vm82_vm6, %v80_v45  ;;  %v69_v47 = vmul.f32 %v67_v46, %v35_v18 }
 0x112   :  { %v74_v48 = vmul.f32 %v90_v35, %v69_v47 }
 0x114   :  { %v79_v49 = vadd.f32 %v91_v38, %v74_v48 }
 0x116   :  { %v81_v50 = vpack.c.bf16 %v79_v49, %v79_v49 }
 0x118   :  { %84 = vst.msk [vmem:[%s144_s3 + $0x4] sm:$0xf] %vm82_vm6, %v81_v50 }

// kernel: bert_for_classification_forward.13
= control target key start
LH: loop header
LB: loop body
LE: loop exit
PB: predicated region body
PF: predicated region fallthrough
CT: control target
= control target key end

     0   :  { %vm42_vm0 = vcmask 261120   ;;  %vm62_vm1 = vcmask 781312   ;;  %s124_s1 = inlined_call_operand.vmem [shape: bf16[32,96], index: 1, kind: input, shape index: {}]   ;;  %s125_s2 = inlined_call_operand.vmem [shape: f32[1,96], index: 2, kind: input, shape index: {}]   ;;  %s126_s0 = inlined_call_operand.vmem [shape: bf16[16,32], index: 0, kind: input, shape index: {}]   ;;  %s127_s3 = inlined_call_operand.vmem [shape: bf16[16,96], index: 3, kind: output, shape index: {}]  }
   0x1   :  { %v84_v0 = vld [vmem:[%s124_s1 + $0x8] sm:$0xff]  ;;  %v83_v1 = vld [vmem:[%s124_s1] sm:$0xff] }
   0x2   :  { %52 = vmatpush.bf16.msra.mxu0 %v84_v0  ;;  %v82_v2 = vld [vmem:[%s126_s0] sm:$0xff] }
   0x3   :  { %v85_v3 = vld [vmem:[%s125_s2] ss:$0 sm:$0xff] }
   0x6   :  { %53 = vmatpush.bf16.msra.mxu0 %v83_v1 }
   0x9   :  { %81 = vmatmul.msk.bf16.vlgmr.msra.gmra.mxu0 %vm42_vm0, %v82_v2 }
  0x86   :  { %v55_v4 = vpop.f32.mrf.mxu0 }
  0x87   :  { %v56_v5 = vadd.f32 %v85_v3, %v55_v4 }
  0x89   :  { %v60_v6 = vpack.c.bf16 %v56_v5, %v56_v5 }
  0x8b   :  { %63 = vst.msk [vmem:[%s127_s3] sm:$0xf] %vm62_vm1, %v60_v6 }
  0x8e   :  { %v57_v7 = vpop.f32.mrf.mxu0 }
  0x8f   :  { %v58_v8 = vadd.f32 %v85_v3, %v57_v7 }
  0x91   :  { %v61_v9 = vpack.c.bf16 %v58_v8, %v58_v8 }
  0x93   :  { %64 = vst.msk [vmem:[%s127_s3 + $0x4] sm:$0xf] %vm62_vm1, %v61_v9 }

// kernel: bert_for_classification_forward.14
= control target key start
LH: loop header
LB: loop body
LE: loop exit
PB: predicated region body
PF: predicated region fallthrough
CT: control target
= control target key end

     0   :  { %s800_s15 = smov 0   ;;  %s802_s16 = smov 0   ;;  %s868_s0 = inlined_call_operand.vmem [shape: bf16[2,4,8,8], index: 0, kind: input, shape index: {}]   ;;  %s869_s1 = inlined_call_operand.vmem [shape: bf16[2,4,8,8], index: 1, kind: input, shape index: {}]   ;;  %s870_s2 = inlined_call_operand.vmem [shape: bf16[2,4,8,8], index: 2, kind: input, shape index: {}]   ;;  %s871_s3 = inlined_call_operand.vmem [shape: f32[2,1,8], index: 3, kind: input, shape index: {}]   ;;  %s872_s4 = inlined_call_operand.vmem [shape: bf16[2,4,8,8], index: 4, kind: output, shape index: {}]  }
   0x1   :  { %s804_s17 = smov 0  }
   0x2 LB: > { %s26_s18 = sadd.s32 1, %s769_s16  ;;  %p687_p0 = scmp.ge.s32.totalorder %s773_s17, 1  ;;  %s773_s17 = sphi %s804_s17, %s14_s17   ;;  %s769_s16 = sphi %s802_s16, %s874_s16   ;;  %s765_s15 = sphi %s800_s15, %s873_s15  }
   0x3   : > { %p28_p1 = scmp.ge.s32.totalorder %s26_s18, 2  ;;  %p225_p2 = scmp.lt.s32.totalorder %s773_s17, 3 }
   0x5   : > { %s876_s18 = smov (%p28_p1, %s26_s18), 0  ;;  %p226_p3 = pnand %p687_p0, %p225_p2 }
   0x6   : > { %p281_p4 = scmp.lt.s32.totalorder (!%p226_p3), %s765_s15, 1 }
   0x7   : > { %229 = sbr.rel (%p226_p3) target bundleno = 562 (0x232), region = 36 }
   0xc   : > { %s878_s15 = smov (!%p281_p4, %s765_s15), 1  ;;  %vm340_vm0 = vcmask 64512   ;;  %vm468_vm1 = vcmask 1043456   ;;  %vm546_vm2 = vcmask 60416  }
   0xd   : > { %s818_s19 = sshll.u32 %s878_s15, 4  ;;  %s312_s22 = scalar_lea.vmem %s871_s3, %s878_s15 }
   0xe   : > { %s298_s25 = scalar_lea.vmem %s869_s1, %s818_s19  ;;  %s288_s28 = scalar_lea.vmem %s868_s0, %s818_s19  ;;  %v734_v12 = vld [vmem:[%s312_s22] ss:$0 sm:$0xff] }
   0xf   : > { %v328_v0 = vld [vmem:[%s298_s25] sm:$0xf]  ;;  %v330_v1 = vld [vmem:[%s298_s25 + $0x8] sm:$0xf]  ;;  %v331_v2 = vld [vmem:[%s298_s25 + $0xc] sm:$0xf]  ;;  %s308_s5 = scalar_lea.vmem %s870_s2, %s818_s19  ;;  %s321_s8 = scalar_lea.vmem %s872_s4, %s818_s19 }
  0x10   : > { %v345_v3 = vsel %vm340_vm0, %v328_v0, 0  ;;  %v383_v4 = vsel %vm340_vm0, %v330_v1, 0  ;;  %v402_v5 = vsel %vm340_vm0, %v331_v2, 0  ;;  %v329_v6 = vld [vmem:[%s298_s25 + $0x4] sm:$0xf] }
  0x11   : > { %354 = vmatpush.bf16.xpose.msra.mxu0 %v345_v3  ;;  %392 = vmatpush.bf16.xpose.msra.mxu2 %v383_v4  ;;  %v364_v7 = vsel %vm340_vm0, %v329_v6, 0  ;;  %v324_v8 = vld [vmem:[%s288_s28] sm:$0xf]  ;;  %v326_v9 = vld [vmem:[%s288_s28 + $0x8] sm:$0xf] }
  0x12   : > { %411 = vmatpush.bf16.xpose.msra.mxu3 %v402_v5  ;;  %373 = vmatpush.bf16.xpose.msra.mxu1 %v364_v7  ;;  %v327_v10 = vld [vmem:[%s288_s28 + $0xc] sm:$0xf]  ;;  %v325_v11 = vld [vmem:[%s288_s28 + $0x4] sm:$0xf]  ;;  %v332_v49 = vld [vmem:[%s308_s5] sm:$0xf] }
  0x13   : > { %v470_v50 = vsel %vm468_vm1, %v332_v49, 0  ;;  %v334_v51 = vld [vmem:[%s308_s5 + $0x8] sm:$0xf]  ;;  %v333_v53 = vld [vmem:[%s308_s5 + $0x4] sm:$0xf] }
  0x14   : > { %v508_v52 = vsel %vm468_vm1, %v334_v51, 0  ;;  %v489_v54 = vsel %vm468_vm1, %v333_v53, 0  ;;  %v335_v55 = vld [vmem:[%s308_s5 + $0xc] sm:$0xf] }
  0x15   : > { %v527_v56 = vsel %vm468_vm1, %v335_v55, 0 }
  0x18   : > { %696 = vmatmul.msk.bf16.vlgmr.msra.gmra.mxu0 %vm340_vm0, %v324_v8  ;;  %698 = vmatmul.msk.bf16.vlgmr.msra.gmra.mxu2 %vm340_vm0, %v326_v9 }
  0x19   : > { %699 = vmatmul.msk.bf16.vlgmr.msra.gmra.mxu3 %vm340_vm0, %v327_v10  ;;  %697 = vmatmul.msk.bf16.vlgmr.msra.gmra.mxu1 %vm340_vm0, %v325_v11 }
  0x1a   : > { %479 = vmatpush.bf16.msrb.mxu0 %v470_v50  ;;  %517 = vmatpush.bf16.msrb.mxu2 %v508_v52 }
  0x1b   : > { %498 = vmatpush.bf16.msrb.mxu1 %v489_v54  ;;  %536 = vmatpush.bf16.msrb.mxu3 %v527_v56 }
  0x95   : > { %v356_v13 = vpop.f32.mrf.mxu0 }
  0x96   : > { %v357_v14 = vadd.f32 %v734_v12, %v356_v13  ;;  %v375_v15 = vpop.f32.mrf.mxu1 }
  0x97   : > { %v376_v17 = vadd.f32 %v734_v12, %v375_v15 }
  0x98   : > { %v417_v16 = vsel %vm340_vm0, %v357_v14, -inf }
  0x99   : > { %418 = vmax.xlane.f32.xlu1 %v417_v16  ;;  %v420_v23 = vsel %vm340_vm0, %v376_v17, -inf }
  0x9b   : > { %v394_v18 = vpop.f32.mrf.mxu2 }
  0x9c   : > { %v395_v19 = vadd.f32 %v734_v12, %v394_v18  ;;  %v413_v20 = vpop.f32.mrf.mxu3 }
  0x9d   : > { %v358_v21 = vpop.f32.mrf.mxu0  ;;  %v414_v25 = vadd.f32 %v734_v12, %v413_v20 }
  0x9e   : > { %v423_v22 = vsel %vm340_vm0, %v395_v19, -inf  ;;  %v377_v24 = vpop.f32.mrf.mxu1 }
  0x9f   : > { %424 = vmax.xlane.f32.xlu0 %v423_v22  ;;  %v426_v28 = vsel %vm340_vm0, %v414_v25, -inf }
  0xa1   : > { %421 = vmax.xlane.f32.xlu1 %v420_v23 }
  0xa3   : > { %v396_v26 = vpop.f32.mrf.mxu2 }
  0xa4   : > { %v415_v27 = vpop.f32.mrf.mxu3 }
  0xa7   : > { %427 = vmax.xlane.f32.xlu0 %v426_v28 }
 0x10c   : > { %v419_v29 = vpop.xlane.xlu1 %418 }
 0x10d   : > { %v429_v30 = vsub.f32 %v357_v14, %v419_v29 }
 0x10f   : > { %v433_v31 = vmul.f32 1.442695, %v429_v30 }
 0x111   : > { %735 = vpow2.f32 %v433_v31 }
 0x112   : > { %v425_v32 = vpop.xlane.xlu0 %424 }
 0x113   : > { %v431_v33 = vsub.f32 %v395_v19, %v425_v32 }
 0x114   : > { %v422_v34 = vpop.xlane.xlu1 %421 }
 0x115   : > { %v437_v35 = vmul.f32 1.442695, %v431_v33  ;;  %v430_v36 = vsub.f32 %v376_v17, %v422_v34 }
 0x117   : > { %v736_v37 = vpop.eup %735  ;;  %737 = vpow2.f32 %v437_v35  ;;  %v435_v38 = vmul.f32 1.442695, %v430_v36 }
 0x118   : > { %v441_v39 = vsel %vm340_vm0, %v736_v37, 0.0 }
 0x119   : > { %739 = vpow2.f32 %v435_v38  ;;  %442 = vadd.xlane.f32.xlu0 %v441_v39 }
 0x11a   : > { %v428_v40 = vpop.xlane.xlu0 %427 }
 0x11b   : > { %v432_v41 = vsub.f32 %v414_v25, %v428_v40 }
 0x11d   : > { %v738_v42 = vpop.eup %737  ;;  %v439_v43 = vmul.f32 1.442695, %v432_v41 }
 0x11e   : > { %v447_v44 = vsel %vm340_vm0, %v738_v42, 0.0 }
 0x11f   : > { %v740_v45 = vpop.eup %739  ;;  %741 = vpow2.f32 %v439_v43  ;;  %448 = vadd.xlane.f32.xlu2 %v447_v44 }
 0x120   : > { %v444_v46 = vsel %vm340_vm0, %v740_v45, 0.0 }
 0x121   : > { %445 = vadd.xlane.f32.xlu1 %v444_v46 }
 0x125   : > { %v742_v47 = vpop.eup %741 }
 0x126   : > { %v450_v48 = vsel %vm340_vm0, %v742_v47, 0.0 }
 0x127   : > { %451 = vadd.xlane.f32.xlu2 %v450_v48 }
 0x18c   : > { %v443_v57 = vpop.xlane.xlu0 %442 }
 0x18d   : > { %743 = vrcp.f32 %v443_v57 }
 0x192   : > { %v449_v58 = vpop.xlane.xlu2 %448 }
 0x193   : > { %v744_v59 = vpop.eup %743  ;;  %745 = vrcp.f32 %v449_v58 }
 0x194   : > { %v457_v60 = vmul.f32 %v744_v59, %v736_v37  ;;  %v446_v61 = vpop.xlane.xlu1 %445 }
 0x195   : > { %747 = vrcp.f32 %v446_v61 }
 0x196   : > { %v461_v62 = vpack.c.bf16 %v457_v60, %v457_v60 }
 0x198   : > { %700 = vmatmul.msk.bf16.vlgmr.msrb.gmra.mxu0 %vm340_vm0, %v461_v62 }
 0x199   : > { %v746_v63 = vpop.eup %745 }
 0x19a   : > { %v459_v0 = vmul.f32 %v746_v63, %v738_v42  ;;  %v452_v1 = vpop.xlane.xlu2 %451 }
 0x19b   : > { %v748_v2 = vpop.eup %747  ;;  %749 = vrcp.f32 %v452_v1 }
 0x19c   : > { %v458_v3 = vmul.f32 %v748_v2, %v740_v45  ;;  %v463_v4 = vpack.c.bf16 %v459_v0, %v459_v0 }
 0x19e   : > { %v462_v5 = vpack.c.bf16 %v458_v3, %v458_v3  ;;  %702 = vmatmul.msk.bf16.vlgmr.msrb.gmra.mxu2 %vm340_vm0, %v463_v4 }
 0x1a0   : > { %701 = vmatmul.msk.bf16.vlgmr.msrb.gmra.mxu1 %vm340_vm0, %v462_v5 }
 0x1a1   : > { %v750_v6 = vpop.eup %749 }
 0x1a2   : > { %v460_v7 = vmul.f32 %v750_v6, %v742_v47 }
 0x1a4   : > { %v464_v8 = vpack.c.bf16 %v460_v7, %v460_v7 }
 0x1a6   : > { %703 = vmatmul.msk.bf16.vlgmr.msrb.gmra.mxu3 %vm340_vm0, %v464_v8 }
 0x215   : > { %v481_v9 = vpop.f32.mrf.mxu0 }
 0x216   : > { %v542_v10 = vpack.c.bf16 %v481_v9, %v481_v9 }
 0x218   : > { %547 = vst.msk [vmem:[%s321_s8] sm:$0xf] %vm546_vm2, %v542_v10 }
 0x21d   : > { %v483_v11 = vpop.f32.mrf.mxu0  ;;  %v500_v12 = vpop.f32.mrf.mxu1 }
 0x21e   : > { %v543_v13 = vpack.c.bf16 %v500_v12, %v500_v12 }
 0x220   : > { %548 = vst.msk [vmem:[%s321_s8 + $0x4] sm:$0xf] %vm546_vm2, %v543_v13 }
 0x221   : > { %v519_v14 = vpop.f32.mrf.mxu2 }
 0x222   : > { %v544_v15 = vpack.c.bf16 %v519_v14, %v519_v14 }
 0x224   : > { %549 = vst.msk [vmem:[%s321_s8 + $0x8] sm:$0xf] %vm546_vm2, %v544_v15 }
 0x225   : > { %v502_v16 = vpop.f32.mrf.mxu1 }
 0x229   : > { %v521_v17 = vpop.f32.mrf.mxu2  ;;  %v538_v18 = vpop.f32.mrf.mxu3 }
 0x22a   : > { %v545_v19 = vpack.c.bf16 %v538_v18, %v538_v18 }
 0x22c   : > { %550 = vst.msk [vmem:[%s321_s8 + $0xc] sm:$0xf] %vm546_vm2, %v545_v19 }
 0x231   : > { %v540_v20 = vpop.f32.mrf.mxu3 }
 0x232 PF: > { %s14_s17 = sadd.s32 1, %s773_s17   ;;  %s873_s15 = smov %s769_s16 }
 0x233   : > { %p11_p5 = scmp.ge.s32.totalorder %s14_s17, 4   ;;  %s874_s16 = smov %s876_s18 }
 0x235   :  { %13 = sbr.rel (!%p11_p5) target bundleno = 2 (0x2), region = 75 }

// kernel: bert_for_classification_forward.16
= control target key start
LH: loop header
LB: loop body
LE: loop exit
PB: predicated region body
PF: predicated region fallthrough
CT: control target
= control target key end

     0   :  { %vm42_vm0 = vcmask 261120   ;;  %vm80_vm1 = vcmask 519168   ;;  %s146_s1 = inlined_call_operand.vmem [shape: bf16[32,64], index: 1, kind: input, shape index: {}]   ;;  %s147_s2 = inlined_call_operand.vmem [shape: f32[1,64], index: 2, kind: input, shape index: {}]   ;;  %s148_s0 = inlined_call_operand.vmem [shape: bf16[16,32], index: 0, kind: input, shape index: {}]   ;;  %s149_s3 = inlined_call_operand.vmem [shape: bf16[16,64], index: 3, kind: output, shape index: {}]  }
   0x1   :  { %v102_v0 = vld [vmem:[%s146_s1 + $0x8] sm:$0xff]  ;;  %v101_v1 = vld [vmem:[%s146_s1] sm:$0xff] }
   0x2   :  { %52 = vmatpush.bf16.msra.mxu0 %v102_v0  ;;  %v100_v2 = vld [vmem:[%s148_s0] sm:$0xff] }
   0x3   :  { %v103_v3 = vld [vmem:[%s147_s2] ss:$0 sm:$0xff] }
   0x6   :  { %53 = vmatpush.bf16.msra.mxu0 %v101_v1 }
   0x9   :  { %99 = vmatmul.msk.bf16.vlgmr.msra.gmra.mxu0 %vm42_vm0, %v100_v2 }
  0x86   :  { %v55_v4 = vpop.f32.mrf.mxu0 }
  0x87   :  { %v56_v5 = vadd.f32 %v103_v3, %v55_v4 }
  0x89   :  { %v62_v6 = vmul.f32 0.044715, %v56_v5  ;;  %v60_v19 = vmul.f32 0.5, %v56_v5 }
  0x8b   :  { %v64_v7 = vmul.f32 %v62_v6, %v56_v5 }
  0x8d   :  { %v66_v8 = vmul.f32 %v64_v7, %v56_v5 }
  0x8e   :  { %v57_v9 = vpop.f32.mrf.mxu0 }
  0x8f   :  { %v68_v10 = vadd.f32 %v66_v8, %v56_v5  ;;  %v58_v11 = vadd.f32 %v103_v3, %v57_v9 }
  0x91   :  { %v70_v12 = vmul.f32 0.7978846, %v68_v10  ;;  %v63_v13 = vmul.f32 0.044715, %v58_v11  ;;  %v61_v24 = vmul.f32 0.5, %v58_v11 }
  0x93   :  { %104 = vtanh.f32 %v70_v12  ;;  %v65_v14 = vmul.f32 %v63_v13, %v58_v11 }
  0x95   :  { %v67_v15 = vmul.f32 %v65_v14, %v58_v11 }
  0x97   :  { %v69_v16 = vadd.f32 %v67_v15, %v58_v11 }
  0x99   :  { %v105_v17 = vpop.eup %104  ;;  %v71_v18 = vmul.f32 0.7978846, %v69_v16 }
  0x9a   :  { %v74_v20 = vadd.f32 1.0, %v105_v17 }
  0x9b   :  { %106 = vtanh.f32 %v71_v18 }
  0x9c   :  { %v76_v21 = vmul.f32 %v74_v20, %v60_v19 }
  0x9e   :  { %v78_v22 = vpack.c.bf16 %v76_v21, %v76_v21 }
  0xa0   :  { %81 = vst.msk [vmem:[%s149_s3] sm:$0xf] %vm80_vm1, %v78_v22 }
  0xa1   :  { %v107_v23 = vpop.eup %106 }
  0xa2   :  { %v75_v25 = vadd.f32 1.0, %v107_v23 }
  0xa4   :  { %v77_v26 = vmul.f32 %v75_v25, %v61_v24 }
  0xa6   :  { %v79_v27 = vpack.c.bf16 %v77_v26, %v77_v26 }
  0xa8   :  { %82 = vst.msk [vmem:[%s149_s3 + $0x4] sm:$0xf] %vm80_vm1, %v79_v27 }

// kernel: bert_for_classification_forward.15
= control target key start
LH: loop header
LB: loop body
LE: loop exit
PB: predicated region body
PF: predicated region fallthrough
CT: control target
= control target key end

     0   :  { %vm28_vm0 = vcmask 261120   ;;  %v198_v1 = vmov 0.0   ;;  %v199_v22 = vmov 32.0   ;;  %vm160_vm6 = vcmask 257024   ;;  %s271_s1 = inlined_call_operand.vmem [shape: bf16[32,32], index: 1, kind: input, shape index: {}]   ;;  %s272_s0 = inlined_call_operand.vmem [shape: bf16[16,32], index: 0, kind: input, shape index: {}]   ;;  %s273_s2 = inlined_call_operand.vmem [shape: f32[1,32], index: 2, kind: input, shape index: {}]   ;;  %s274_s3 = inlined_call_operand.vmem [shape: bf16[16,32], index: 3, kind: input, shape index: {}]   ;;  %s275_s4 = inlined_call_operand.vmem [shape: f32[1,32], index: 4, kind: input, shape index: {}]   ;;  %s276_s5 = inlined_call_operand.vmem [shape: f32[1,32], index: 5, kind: input, shape index: {}]   ;;  %s277_s6 = inlined_call_operand.vmem [shape: bf16[16,32], index: 6, kind: output, shape index: {}]  }
   0x1   :  { %v182_v0 = vld [vmem:[%s271_s1 + $0x8] sm:$0xff]  ;;  %29 = vst.msk [vmem:[#allocation2] sm:$0xff] %vm28_vm0, %v198_v1  ;;  %v181_v2 = vld [vmem:[%s271_s1] sm:$0xff]  ;;  %192 = vrcp.f32 %v199_v22 }
   0x2   :  { %30 = vst.msk [vmem:[#allocation2 + $0x8] sm:$0xff] %vm28_vm0, %v198_v1  ;;  %66 = vmatpush.bf16.msra.mxu0 %v182_v0  ;;  %v180_v3 = vld [vmem:[%s272_s0] sm:$0xff] }
   0x3   :  { %v184_v8 = vld [vmem:[%s274_s3] sm:$0xff]  }
   0x4   :  { %v189_v9 = vld [vmem:[%s273_s2] ss:$0 sm:$0xff]  ;;  %v185_v12 = vunpack.c.l.bf16 %v184_v8  ;;  %v186_v17 = vunpack.c.h.bf16 %v184_v8 }
   0x5   :  { %v190_v53 = vld [vmem:[%s275_s4] ss:$0 sm:$0xff] }
   0x6   :  { %67 = vmatpush.bf16.msra.mxu0 %v181_v2  ;;  %v191_v56 = vld [vmem:[%s276_s5] ss:$0 sm:$0xff] }
   0x7   :  { %v193_v23 = vpop.eup %192 }
   0x8   :  { %v31_v4 = vld [vmem:[#allocation2] sm:$0xff]  ;;  %v104_v24 = vmul.f32 32.0, %v193_v23  ;;  %vm108_vm1 = vweird.f32 %v193_v23 }
   0x9   :  { %179 = vmatmul.msk.bf16.vlgmr.msra.gmra.mxu0 %vm28_vm0, %v180_v3  ;;  %v32_v7 = vld [vmem:[#allocation2 + $0x8] sm:$0xff] }
   0xa   :  { %v105_v25 = vsub.f32 1.0, %v104_v24 }
   0xc   :  { %v106_v26 = vmul.f32 %v193_v23, %v105_v25 }
   0xe   :  { %v107_v27 = vadd.f32 %v193_v23, %v106_v26 }
  0x10   :  { %v109_v28 = vsel %vm108_vm1, %v193_v23, %v107_v27 }
  0x86   :  { %v69_v5 = vpop.f32.mrf.mxu0 }
  0x87   :  { %v74_v6 = vadd.f32 %v69_v5, %v31_v4 }
  0x89   :  { %76 = vst.msk [vmem:[#allocation2] sm:$0xff] %vm28_vm0, %v74_v6 }
  0x8e   :  { %v71_v10 = vpop.f32.mrf.mxu0 }
  0x8f   :  { %v75_v11 = vadd.f32 %v71_v10, %v32_v7 }
  0x90   :  { %v81_v13 = vld [vmem:[#allocation2] sm:$0xff] }
  0x91   :  { %77 = vst.msk [vmem:[#allocation2 + $0x8] sm:$0xff] %vm28_vm0, %v75_v11  ;;  %v87_v14 = vadd.f32 %v189_v9, %v81_v13 }
  0x93   :  { %v93_v15 = vadd.f32 %v185_v12, %v87_v14 }
  0x95   :  { %v97_v16 = vsel %vm28_vm0, %v93_v15, 0.0 }
  0x96   :  { %98 = vadd.xlane.f32.xlu0 %v97_v16 }
  0x98   :  { %v82_v18 = vld [vmem:[#allocation2 + $0x8] sm:$0xff] }
  0x99   :  { %v88_v19 = vadd.f32 %v189_v9, %v82_v18 }
  0x9b   :  { %v94_v20 = vadd.f32 %v186_v17, %v88_v19 }
  0x9d   :  { %v100_v21 = vsel %vm28_vm0, %v94_v20, 0.0 }
  0x9e   :  { %101 = vadd.xlane.f32.xlu0 %v100_v21 }
 0x109   :  { %v99_v29 = vpop.xlane.xlu0 %98 }
 0x10a   :  { %v110_v30 = vmul.f32 %v109_v28, %v99_v29 }
 0x10c   :  { %v112_v31 = vsub.f32 %v93_v15, %v110_v30 }
 0x10e   :  { %v114_v32 = vmul.f32 %v112_v31, %v112_v31 }
 0x110   :  { %v116_v33 = vsel %vm28_vm0, %v114_v32, 0.0 }
 0x111   :  { %117 = vadd.xlane.f32.xlu1 %v116_v33  ;;  %v102_v34 = vpop.xlane.xlu0 %101 }
 0x112   :  { %v111_v35 = vmul.f32 %v109_v28, %v102_v34 }
 0x114   :  { %v113_v36 = vsub.f32 %v94_v20, %v111_v35 }
 0x116   :  { %v115_v37 = vmul.f32 %v113_v36, %v113_v36 }
 0x118   :  { %v119_v38 = vsel %vm28_vm0, %v115_v37, 0.0 }
 0x119   :  { %120 = vadd.xlane.f32.xlu1 %v119_v38 }
 0x184   :  { %v118_v39 = vpop.xlane.xlu1 %117 }
 0x185   :  { %v122_v40 = vmul.f32 %v118_v39, %v109_v28 }
 0x187   :  { %v124_v41 = vadd.f32 1e-12, %v122_v40 }
 0x189   :  { %194 = vrsqrt.f32 %v124_v41  ;;  %vm132_vm3 = vweird.f32 %v124_v41 }
 0x18c   :  { %v121_v42 = vpop.xlane.xlu1 %120 }
 0x18d   :  { %v123_v43 = vmul.f32 %v121_v42, %v109_v28 }
 0x18f   :  { %v195_v44 = vpop.eup %194  ;;  %v125_v45 = vadd.f32 1e-12, %v123_v43 }
 0x190   :  { %v127_v46 = vmul.f32 %v195_v44, %v124_v41  ;;  %vm133_vm2 = vweird.f32 %v195_v44 }
 0x191   :  { %196 = vrsqrt.f32 %v125_v45  ;;  %vm134_vm4 = vmor %vm132_vm3, %vm133_vm2  ;;  %vm142_vm7 = vweird.f32 %v125_v45 }
 0x192   :  { %v128_v47 = vmul.f32 %v195_v44, %v127_v46 }
 0x194   :  { %v129_v48 = vmul.f32 0.5, %v128_v47 }
 0x196   :  { %v130_v49 = vsub.f32 1.5, %v129_v48 }
 0x197   :  { %v197_v50 = vpop.eup %196 }
 0x198   :  { %v131_v51 = vmul.f32 %v195_v44, %v130_v49  ;;  %v137_v52 = vmul.f32 %v197_v50, %v125_v45  ;;  %vm143_vm5 = vweird.f32 %v197_v50 }
 0x199   :  { %vm144_vm8 = vmor %vm142_vm7, %vm143_vm5 }
 0x19a   :  { %v135_v54 = vsel %vm134_vm4, %v195_v44, %v131_v51  ;;  %v138_v55 = vmul.f32 %v197_v50, %v137_v52 }
 0x19b   :  { %v146_v57 = vmul.f32 %v135_v54, %v112_v31 }
 0x19c   :  { %v139_v58 = vmul.f32 0.5, %v138_v55 }
 0x19d   :  { %v151_v59 = vmul.f32 %v190_v53, %v146_v57 }
 0x19e   :  { %v140_v60 = vsub.f32 1.5, %v139_v58 }
 0x19f   :  { %v156_v61 = vadd.f32 %v191_v56, %v151_v59 }
 0x1a0   :  { %v141_v62 = vmul.f32 %v197_v50, %v140_v60 }
 0x1a1   :  { %v158_v63 = vpack.c.bf16 %v156_v61, %v156_v61 }
 0x1a2   :  { %v145_v0 = vsel %vm144_vm8, %v197_v50, %v141_v62 }
 0x1a3   :  { %161 = vst.msk [vmem:[%s277_s6] sm:$0xf] %vm160_vm6, %v158_v63  ;;  %v147_v1 = vmul.f32 %v145_v0, %v113_v36 }
 0x1a5   :  { %v152_v2 = vmul.f32 %v190_v53, %v147_v1 }
 0x1a7   :  { %v157_v3 = vadd.f32 %v191_v56, %v152_v2 }
 0x1a9   :  { %v159_v4 = vpack.c.bf16 %v157_v3, %v157_v3 }
 0x1ab   :  { %162 = vst.msk [vmem:[%s277_s6 + $0x4] sm:$0xf] %vm160_vm6, %v159_v4 }

// kernel: bert_for_classification_forward.17
= control target key start
LH: loop header
LB: loop body
LE: loop exit
PB: predicated region body
PF: predicated region fallthrough
CT: control target
= control target key end

     0   :  { %vm28_vm0 = vcmask 261120   ;;  %v225_v1 = vmov 0.0   ;;  %vm72_vm1 = vcmask 523264   ;;  %v226_v24 = vmov 32.0   ;;  %s303_s1 = inlined_call_operand.vmem [shape: bf16[64,32], index: 1, kind: input, shape index: {}]   ;;  %s304_s0 = inlined_call_operand.vmem [shape: bf16[16,64], index: 0, kind: input, shape index: {}]   ;;  %s305_s2 = inlined_call_operand.vmem [shape: f32[1,32], index: 2, kind: input, shape index: {}]   ;;  %s306_s3 = inlined_call_operand.vmem [shape: bf16[16,32], index: 3, kind: input, shape index: {}]   ;;  %s307_s4 = inlined_call_operand.vmem [shape: f32[1,32], index: 4, kind: input, shape index: {}]   ;;  %s308_s5 = inlined_call_operand.vmem [shape: f32[1,32], index: 5, kind: input, shape index: {}]   ;;  %s309_s6 = inlined_call_operand.vmem [shape: bf16[16,32], index: 6, kind: output, shape index: {}]  }
   0x1   :  { %v209_v0 = vld [vmem:[%s303_s1 + $0x18] sm:$0xff]  ;;  %29 = vst.msk [vmem:[#allocation2] sm:$0xff] %vm28_vm0, %v225_v1  ;;  %v208_v2 = vld [vmem:[%s303_s1 + $0x10] sm:$0xff]  ;;  %v207_v3 = vld [vmem:[%s303_s1 + $0x8] sm:$0xff]  ;;  %219 = vrcp.f32 %v226_v24  ;;  %vm177_vm7 = vcmask 257024  }
   0x2   :  { %30 = vst.msk [vmem:[#allocation2 + $0x8] sm:$0xff] %vm28_vm0, %v225_v1  ;;  %80 = vmatpush.bf16.msra.mxu0 %v209_v0  ;;  %v206_v4 = vld [vmem:[%s303_s1] sm:$0xff] }
   0x3   :  { %v205_v5 = vld [vmem:[%s304_s0] sm:$0xff] }
   0x4   :  { %v211_v10 = vld [vmem:[%s306_s3] sm:$0xff]  }
   0x5   :  { %v216_v11 = vld [vmem:[%s305_s2] ss:$0 sm:$0xff]  ;;  %v212_v14 = vunpack.c.l.bf16 %v211_v10  ;;  %v213_v19 = vunpack.c.h.bf16 %v211_v10 }
   0x6   :  { %81 = vmatpush.bf16.msra.mxu0 %v208_v2  ;;  %v217_v55 = vld [vmem:[%s307_s4] ss:$0 sm:$0xff] }
   0x7   :  { %v220_v25 = vpop.eup %219  ;;  %v218_v58 = vld [vmem:[%s308_s5] ss:$0 sm:$0xff] }
   0x8   :  { %v31_v6 = vld [vmem:[#allocation2] sm:$0xff]  ;;  %v121_v26 = vmul.f32 32.0, %v220_v25  ;;  %vm125_vm2 = vweird.f32 %v220_v25 }
   0x9   :  { %v32_v9 = vld [vmem:[#allocation2 + $0x8] sm:$0xff] }
   0xa   :  { %82 = vmatpush.bf16.msra.mxu0 %v207_v3  ;;  %v122_v27 = vsub.f32 1.0, %v121_v26 }
   0xc   :  { %v123_v28 = vmul.f32 %v220_v25, %v122_v27 }
   0xe   :  { %83 = vmatpush.bf16.msra.mxu0 %v206_v4  ;;  %v124_v29 = vadd.f32 %v220_v25, %v123_v28 }
  0x10   :  { %v126_v30 = vsel %vm125_vm2, %v220_v25, %v124_v29 }
  0x11   :  { %204 = vmatmul.msk.bf16.vlgmr.msra.gmra.mxu0 %vm72_vm1, %v205_v5 }
  0x8e   :  { %v85_v7 = vpop.f32.mrf.mxu0 }
  0x8f   :  { %v90_v8 = vadd.f32 %v85_v7, %v31_v6 }
  0x91   :  { %93 = vst.msk [vmem:[#allocation2] sm:$0xff] %vm28_vm0, %v90_v8 }
  0x96   :  { %v87_v12 = vpop.f32.mrf.mxu0 }
  0x97   :  { %v91_v13 = vadd.f32 %v87_v12, %v32_v9 }
  0x98   :  { %v98_v15 = vld [vmem:[#allocation2] sm:$0xff] }
  0x99   :  { %94 = vst.msk [vmem:[#allocation2 + $0x8] sm:$0xff] %vm28_vm0, %v91_v13  ;;  %v104_v16 = vadd.f32 %v216_v11, %v98_v15 }
  0x9b   :  { %v110_v17 = vadd.f32 %v212_v14, %v104_v16 }
  0x9d   :  { %v114_v18 = vsel %vm28_vm0, %v110_v17, 0.0 }
  0x9e   :  { %115 = vadd.xlane.f32.xlu0 %v114_v18 }
  0xa0   :  { %v99_v20 = vld [vmem:[#allocation2 + $0x8] sm:$0xff] }
  0xa1   :  { %v105_v21 = vadd.f32 %v216_v11, %v99_v20 }
  0xa3   :  { %v111_v22 = vadd.f32 %v213_v19, %v105_v21 }
  0xa5   :  { %v117_v23 = vsel %vm28_vm0, %v111_v22, 0.0 }
  0xa6   :  { %118 = vadd.xlane.f32.xlu0 %v117_v23 }
 0x111   :  { %v116_v31 = vpop.xlane.xlu0 %115 }
 0x112   :  { %v127_v32 = vmul.f32 %v126_v30, %v116_v31 }
 0x114   :  { %v129_v33 = vsub.f32 %v110_v17, %v127_v32 }
 0x116   :  { %v131_v34 = vmul.f32 %v129_v33, %v129_v33 }
 0x118   :  { %v133_v35 = vsel %vm28_vm0, %v131_v34, 0.0 }
 0x119   :  { %134 = vadd.xlane.f32.xlu1 %v133_v35  ;;  %v119_v36 = vpop.xlane.xlu0 %118 }
 0x11a   :  { %v128_v37 = vmul.f32 %v126_v30, %v119_v36 }
 0x11c   :  { %v130_v38 = vsub.f32 %v111_v22, %v128_v37 }
 0x11e   :  { %v132_v39 = vmul.f32 %v130_v38, %v130_v38 }
 0x120   :  { %v136_v40 = vsel %vm28_vm0, %v132_v39, 0.0 }
 0x121   :  { %137 = vadd.xlane.f32.xlu1 %v136_v40 }
 0x18c   :  { %v135_v41 = vpop.xlane.xlu1 %134 }
 0x18d   :  { %v139_v42 = vmul.f32 %v135_v41, %v126_v30 }
 0x18f   :  { %v141_v43 = vadd.f32 1e-12, %v139_v42 }
 0x191   :  { %221 = vrsqrt.f32 %v141_v43  ;;  %vm149_vm4 = vweird.f32 %v141_v43 }
 0x194   :  { %v138_v44 = vpop.xlane.xlu1 %137 }
 0x195   :  { %v140_v45 = vmul.f32 %v138_v44, %v126_v30 }
 0x197   :  { %v222_v46 = vpop.eup %221  ;;  %v142_v47 = vadd.f32 1e-12, %v140_v45 }
 0x198   :  { %v144_v48 = vmul.f32 %v222_v46, %v141_v43  ;;  %vm150_vm3 = vweird.f32 %v222_v46 }
 0x199   :  { %223 = vrsqrt.f32 %v142_v47  ;;  %vm151_vm5 = vmor %vm149_vm4, %vm150_vm3  ;;  %vm159_vm8 = vweird.f32 %v142_v47 }
 0x19a   :  { %v145_v49 = vmul.f32 %v222_v46, %v144_v48 }
 0x19c   :  { %v146_v50 = vmul.f32 0.5, %v145_v49 }
 0x19e   :  { %v147_v51 = vsub.f32 1.5, %v146_v50 }
 0x19f   :  { %v224_v52 = vpop.eup %223 }
 0x1a0   :  { %v148_v53 = vmul.f32 %v222_v46, %v147_v51  ;;  %v154_v54 = vmul.f32 %v224_v52, %v142_v47  ;;  %vm160_vm6 = vweird.f32 %v224_v52 }
 0x1a1   :  { %vm161_vm9 = vmor %vm159_vm8, %vm160_vm6 }
 0x1a2   :  { %v152_v56 = vsel %vm151_vm5, %v222_v46, %v148_v53  ;;  %v155_v57 = vmul.f32 %v224_v52, %v154_v54 }
 0x1a3   :  { %v163_v59 = vmul.f32 %v152_v56, %v129_v33 }
 0x1a4   :  { %v156_v60 = vmul.f32 0.5, %v155_v57 }
 0x1a5   :  { %v168_v61 = vmul.f32 %v217_v55, %v163_v59 }
 0x1a6   :  { %v157_v62 = vsub.f32 1.5, %v156_v60 }
 0x1a7   :  { %v173_v63 = vadd.f32 %v218_v58, %v168_v61 }
 0x1a8   :  { %v158_v0 = vmul.f32 %v224_v52, %v157_v62 }
 0x1a9   :  { %v175_v1 = vpack.c.bf16 %v173_v63, %v173_v63 }
 0x1aa   :  { %v162_v2 = vsel %vm161_vm9, %v224_v52, %v158_v0 }
 0x1ab   :  { %178 = vst.msk [vmem:[%s309_s6] sm:$0xf] %vm177_vm7, %v175_v1  ;;  %v164_v3 = vmul.f32 %v162_v2, %v130_v38 }
 0x1ad   :  { %v169_v4 = vmul.f32 %v217_v55, %v164_v3 }
 0x1af   :  { %v174_v5 = vadd.f32 %v218_v58, %v169_v4 }
 0x1b1   :  { %v176_v6 = vpack.c.bf16 %v174_v5, %v174_v5 }
 0x1b3   :  { %179 = vst.msk [vmem:[%s309_s6 + $0x4] sm:$0xf] %vm177_vm7, %v176_v6 }

// kernel: bert_for_classification_forward.23
= control target key start
LH: loop header
LB: loop body
LE: loop exit
PB: predicated region body
PF: predicated region fallthrough
CT: control target
= control target key end

     0   :  { %s224_s0 = inlined_call_operand.vmem [shape: bf16[2,32], index: 0, kind: input, shape index: {}]   ;;  %s225_s1 = inlined_call_operand.vmem [shape: bf16[32,32], index: 1, kind: input, shape index: {}]   ;;  %s226_s2 = inlined_call_operand.vmem [shape: f32[1,32], index: 2, kind: input, shape index: {}]   ;;  %s227_s3 = inlined_call_operand.vmem [shape: bf16[32,3], index: 3, kind: input, shape index: {}]   ;;  %s228_s4 = inlined_call_operand.vmem [shape: f32[1,3], index: 4, kind: input, shape index: {}]   ;;  %s229_s5 = inlined_call_operand.hbm [shape: f32[2,3], index: 5, kind: output, shape index: {}]  }
   0x1   :  { %v135_v0 = vld [vmem:[%s225_s1 + $0x8] sm:$0xff]  ;;  %v134_v1 = vld [vmem:[%s225_s1] sm:$0xff] }
   0x2   :  { %53 = vmatpush.bf16.msra.mxu0 %v135_v0 }
   0x3   :  { %10 = vsyncpa [#allocation3], 0  ;;  %v22_v2 = vld [vmem:[%s224_s0] sm:$0x1]  ;;  %vm43_vm0 = vcmask 261120   ;;  %v137_v3 = vld [vmem:[%s227_s3 + $0x8] sm:$0xff] }
   0x4   :  { %91 = vmatpush.bf16.msra.mxu1 %v137_v3  ;;  %v136_v4 = vld [vmem:[%s227_s3] sm:$0xff]  ;;  %s169_s30 = smov [#allocation2]   ;;  %s107_s8 = sshll.u32 %s229_s5, 4  ;;  %vm98_vm1 = vcmask 17408   ;;  %s108_s8 = int_to_ptr.hbm [resolvable:$true] %s107_s8 }
   0x5   :  { %v139_v5 = vld [vmem:[%s226_s2] ss:$0 sm:$0xff]  ;;  %s105_s6 = sshll.u32 %s169_s30, 4  ;;  %s106_s6 = int_to_ptr.vmem [resolvable:$true] %s105_s6 }
   0x6   :  { %54 = vmatpush.bf16.msra.mxu0 %v134_v1  ;;  %v140_v11 = vld [vmem:[%s228_s4] ss:$0 sm:$0xff] }
   0x8   :  { %92 = vmatpush.bf16.msra.mxu1 %v136_v4 }
   0x9   :  { %124 = vmatmul.msk.bf16.vlgmr.msra.gmra.mxu0 %vm43_vm0, %v22_v2 }
  0x86   :  { %v56_v6 = vpop.f32.mrf.mxu0 }
  0x87   :  { %v57_v7 = vadd.f32 %v139_v5, %v56_v6 }
  0x89   :  { %141 = vtanh.f32 %v57_v7 }
  0x8e   :  { %v58_v8 = vpop.f32.mrf.mxu0 }
  0x8f   :  { %v142_v9 = vpop.eup %141 }
  0x90   :  { %v61_v10 = vpack.c.bf16 %v142_v9, %v142_v9 }
  0x92   :  { %133 = vmatmul.msk.bf16.vlgmr.msra.gmra.mxu1 %vm43_vm0, %v61_v10 }
 0x10f   :  { %v94_v12 = vpop.f32.mrf.mxu1 }
 0x110   :  { %v95_v13 = vadd.f32 %v140_v11, %v94_v12 }
 0x112   :  { %99 = vst.msk [vmem:[#allocation2] sm:$0x3] %vm98_vm1, %v95_v13 }
 0x113   :  { %110 = dma.vmem_to_hbm [thread:$0]  %s106_s6, 32, %s108_s8, [#allocation3]  }
 0x117   :  { %v96_v14 = vpop.f32.mrf.mxu1 }
 0x118   :  { %167 = dma.done.wait [#allocation3], 32  }
 0x119   :  { %168 = vsyncadd [#allocation3], 4294967264 }
 0x11a   :  { %115 = vsyncpa [#allocation3], 1 }

</bundles_post_ra>
